<compile_context>
chip_gen: v7x
topology: tpu7x:2x2x1
jax: 0.10.0
libtpu: 0.0.40
codegen_flags: <defaults>
</compile_context>

<pallas_src>
import functools

import jax
import jax.numpy as jnp
from jax.experimental import pallas as pl
from jax.experimental.pallas import tpu as pltpu

LANE = 128
BF16_SUBLANE = 16          # packed sublane group for bf16 operands
BATCH_BLOCK_CAP = 256      # MXU row height on v6e/v7x (128 is marginal on v5e)
MEGACORE_MIN_BATCH = 512   # only split across TCs when per-core weight DMA amortizes


def _round_up(n, m):
    return ((n + m - 1) // m) * m


def _actor_dense_kernel(x_ref, w1_ref, b1_ref, w2_ref, b2_ref, w3_ref, b3_ref,
                        o_ref, *, max_action):
    # Layer 1: bf16 x bf16 matmul on the MXU, f32 accumulation, f32 bias+relu.
    h1 = jnp.dot(x_ref[...], w1_ref[...], preferred_element_type=jnp.float32)
    h1 = jnp.maximum(h1 + b1_ref[...], 0.0)
    # Layer 2.
    h2 = jnp.dot(h1.astype(w2_ref.dtype), w2_ref[...],
                 preferred_element_type=jnp.float32)
    h2 = jnp.maximum(h2 + b2_ref[...], 0.0)
    # Layer 3 + tanh scaled by max_action (EUP handles tanh; epilogue stays f32).
    h3 = jnp.dot(h2.astype(w3_ref.dtype), w3_ref[...],
                 preferred_element_type=jnp.float32)
    o_ref[...] = (max_action * jnp.tanh(h3 + b3_ref[...])).astype(o_ref.dtype)


def _pad_to(a, shape):
    return jnp.pad(a, [(0, t - s) for s, t in zip(a.shape, shape)])


def pad_and_cast_params(params, weight_dtype=jnp.bfloat16):
    """Zero-pad all feature dims to multiples of 128 and cast weights to bf16.

    Zero padding is exact: padded weight columns + zero bias give relu(0)=0
    activations, and padded weight rows multiply those zeros, so the valid
    output slice is unchanged. Do this ONCE per set of weights (not per call).
    """
    d0, d1 = params["W1"].shape
    d2 = params["W2"].shape[1]
    d3 = params["W3"].shape[1]
    p0, p1, p2, p3 = (_round_up(d, LANE) for d in (d0, d1, d2, d3))
    return {
        "W1": _pad_to(params["W1"], (p0, p1)).astype(weight_dtype),
        "b1": _pad_to(params["b1"], (1, p1)).astype(jnp.float32),
        "W2": _pad_to(params["W2"], (p1, p2)).astype(weight_dtype),
        "b2": _pad_to(params["b2"], (1, p2)).astype(jnp.float32),
        "W3": _pad_to(params["W3"], (p2, p3)).astype(weight_dtype),
        "b3": _pad_to(params["b3"], (1, p3)).astype(jnp.float32),
    }


def _resident_spec(shape):
    """BlockSpec for weights/biases: constant index_map (tile stays resident in
    VMEM across grid steps) + a single pipeline buffer (no useless double
    buffer). Falls back to default buffering on Pallas versions without
    pipeline_mode support."""
    try:
        return pl.BlockSpec(shape, lambda i: (0, 0),
                            pipeline_mode=pl.Buffered(1))
    except Exception:  # pragma: no cover - older Pallas
        return pl.BlockSpec(shape, lambda i: (0, 0))


def _batch_blocking(batch):
    """Pick (batch_block, num_blocks, padded_batch).

    batch_block is a multiple of 16 (bf16 sublane packing), capped at
    BATCH_BLOCK_CAP, and sized so small batches get exactly one grid step and
    larger batches split with minimal padding rows.
    """
    padded_min = _round_up(batch, BF16_SUBLANE)
    num_blocks = pl.cdiv(padded_min, BATCH_BLOCK_CAP)
    batch_block = _round_up(pl.cdiv(batch, num_blocks), BF16_SUBLANE)
    num_blocks = pl.cdiv(batch, batch_block)
    return batch_block, num_blocks, num_blocks * batch_block


def actor_dense_forward(x, padded_params, max_action, action_dim):
    """x: (batch, state_dim_flat) float32. padded_params: from pad_and_cast_params."""
    w1, b1 = padded_params["W1"], padded_params["b1"]
    w2, b2 = padded_params["W2"], padded_params["b2"]
    w3, b3 = padded_params["W3"], padded_params["b3"]

    batch, in_dim = x.shape
    p0, p1 = w1.shape          # padded state dim / hidden1
    p2 = w2.shape[1]           # padded hidden2
    p3 = w3.shape[1]           # padded action dim (lane-dense output)

    batch_block, num_blocks, padded_batch = _batch_blocking(batch)
    x_p = jnp.pad(x, ((0, padded_batch - batch), (0, p0 - in_dim))).astype(w1.dtype)

    kernel = functools.partial(_actor_dense_kernel, max_action=float(max_action))

    # Only shard the batch axis across TensorCores (v7x megacore) when each
    # core has enough real rows to amortize its own ~1.5 MB weight DMA.
    use_megacore = (num_blocks >= 2) and (batch >= MEGACORE_MIN_BATCH)
    dim_sem = ("parallel",) if use_megacore else ("arbitrary",)

    # Advisory cost estimate so XLA can overlap this latency-bound call.
    mac = p0 * p1 + p1 * p2 + p2 * p3
    weight_bytes = 2 * mac                         # bf16 weights
    bias_bytes = 4 * (p1 + p2 + p3)                # f32 biases
    io_bytes = 2 * padded_batch * p0 + 4 * padded_batch * p3
    cost = pl.CostEstimate(
        flops=2 * padded_batch * mac,
        transcendentals=padded_batch * p3,
        bytes_accessed=weight_bytes + bias_bytes + io_bytes)

    out_p = pl.pallas_call(
        kernel,
        out_shape=jax.ShapeDtypeStruct((padded_batch, p3), jnp.float32),
        grid_spec=pltpu.PrefetchScalarGridSpec(
            num_scalar_prefetch=0,
            grid=(num_blocks,),
            in_specs=[
                pl.BlockSpec((batch_block, p0), lambda i: (i, 0)),
                _resident_spec(w1.shape),
                _resident_spec(b1.shape),
                _resident_spec(w2.shape),
                _resident_spec(b2.shape),
                _resident_spec(w3.shape),
                _resident_spec(b3.shape),
            ],
            out_specs=pl.BlockSpec((batch_block, p3), lambda i: (i, 0)),
        ),
        compiler_params=pltpu.CompilerParams(dimension_semantics=dim_sem),
        cost_estimate=cost,
    )(x_p, w1, b1, w2, b2, w3, b3)

    return out_p[:batch, :action_dim]


def init_actor_dense_params(key, state_dim_flat, action_dim):
    """Deterministic synthetic init. Shapes match nn.Linear(state_dim,400),
    Linear(400,300), Linear(300,action_dim); weights stored as (in, out)."""
    k1, k2, k3, k4, k5, k6 = jax.random.split(key, 6)
    s = 0.05
    return {
        "W1": s * jax.random.normal(k1, (state_dim_flat, 400), jnp.float32),
        "b1": s * jax.random.normal(k2, (1, 400), jnp.float32),
        "W2": s * jax.random.normal(k3, (400, 300), jnp.float32),
        "b2": s * jax.random.normal(k4, (1, 300), jnp.float32),
        "W3": s * jax.random.normal(k5, (300, action_dim), jnp.float32),
        "b3": s * jax.random.normal(k6, (1, action_dim), jnp.float32),
    }


def actor_dense_reference(x, params, max_action):
    """Pure-JAX reference mirroring the kernel's bf16 operand quantization
    (f32 accumulation), so comparison tolerance can stay tight."""
    def q(a):
        return a.astype(jnp.bfloat16).astype(jnp.float32)
    h1 = jnp.maximum(q(x) @ q(params["W1"]) + params["b1"], 0.0)
    h2 = jnp.maximum(q(h1) @ q(params["W2"]) + params["b2"], 0.0)
    return max_action * jnp.tanh(q(h2) @ q(params["W3"]) + params["b3"])


if __name__ == "__main__":
    # state_dim = (4, 16, 16) -> flattened to 1024; action_dim = 2; max_action = 1.0
    state_dim_flat = 4 * 16 * 16
    action_dim = 2
    max_action = 1.0
    batch = 2

    key = jax.random.PRNGKey(0)
    k_params, k_x = jax.random.split(key)
    params = init_actor_dense_params(k_params, state_dim_flat, action_dim)
    padded_params = pad_and_cast_params(params)   # one-time weight prep

    # Input is the (pre-flattened) state, as ActorDense.forward expects.
    x = jax.random.normal(k_x, (batch, state_dim_flat), jnp.float32)

    out = actor_dense_forward(x, padded_params, max_action, action_dim)
    out = jax.block_until_ready(out)

    ref = actor_dense_reference(x, params, max_action)
    assert out.shape == (batch, action_dim)
    assert jnp.allclose(out, ref, atol=2e-3, rtol=2e-3), "mismatch vs reference"

    print("KERNEL_OK")
</pallas_src>

<mosaic_0001>
module attributes {stable_mosaic.version = 11 : i64} {
  func.func @_actor_dense_kernel(%arg0: i32, %arg1: memref<16x1024xbf16, #tpu.memory_space<vmem>>, %arg2: memref<1024x512xbf16, #tpu.memory_space<vmem>>, %arg3: memref<1x512xf32, #tpu.memory_space<vmem>>, %arg4: memref<512x384xbf16, #tpu.memory_space<vmem>>, %arg5: memref<1x384xf32, #tpu.memory_space<vmem>>, %arg6: memref<384x128xbf16, #tpu.memory_space<vmem>>, %arg7: memref<1x128xf32, #tpu.memory_space<vmem>>, %arg8: memref<16x128xf32, #tpu.memory_space<vmem>>) attributes {dimension_semantics = [#tpu.dimension_semantics<arbitrary>], iteration_bounds = array<i64: 1>, scalar_prefetch = 0 : i64, scratch_operands = 0 : i64, tpu.core_type = #tpu.core_type<tc>, window_params = [{transform_indices = @transform_0, window_bounds = array<i64: 16, 1024>}, {pipeline_mode = #tpu.pipeline_mode<synchronous>, transform_indices = @transform_1, window_bounds = array<i64: 1024, 512>}, {pipeline_mode = #tpu.pipeline_mode<synchronous>, transform_indices = @transform_2, window_bounds = array<i64: 1, 512>}, {pipeline_mode = #tpu.pipeline_mode<synchronous>, transform_indices = @transform_3, window_bounds = array<i64: 512, 384>}, {pipeline_mode = #tpu.pipeline_mode<synchronous>, transform_indices = @transform_4, window_bounds = array<i64: 1, 384>}, {pipeline_mode = #tpu.pipeline_mode<synchronous>, transform_indices = @transform_5, window_bounds = array<i64: 384, 128>}, {pipeline_mode = #tpu.pipeline_mode<synchronous>, transform_indices = @transform_6, window_bounds = array<i64: 1, 128>}, {transform_indices = @transform_7, window_bounds = array<i64: 16, 128>}]} {
    %c0 = arith.constant 0 : index
    %c0_0 = arith.constant 0 : index
    %0 = vector.load %arg1[%c0, %c0_0] : memref<16x1024xbf16, #tpu.memory_space<vmem>>, vector<16x1024xbf16>
    %c0_1 = arith.constant 0 : index
    %c0_2 = arith.constant 0 : index
    %1 = vector.load %arg2[%c0_1, %c0_2] : memref<1024x512xbf16, #tpu.memory_space<vmem>>, vector<1024x512xbf16>
    %cst = arith.constant dense<0.000000e+00> : vector<16x512xf32>
    %2 = tpu.matmul %0, %1, %cst {dimension_numbers = #tpu.dot_dimension_numbers<[1], [0], [0], [1], [0, 0, 1, 1], [], []>} : vector<16x1024xbf16>, vector<1024x512xbf16>, vector<16x512xf32> -> vector<16x512xf32>
    %c0_3 = arith.constant 0 : index
    %c0_4 = arith.constant 0 : index
    %3 = vector.load %arg3[%c0_3, %c0_4] : memref<1x512xf32, #tpu.memory_space<vmem>>, vector<1x512xf32>
    %4 = vector.broadcast %3 : vector<1x512xf32> to vector<16x512xf32>
    %5 = arith.addf %2, %4 : vector<16x512xf32>
    %cst_5 = arith.constant 0.000000e+00 : f32
    %6 = vector.broadcast %cst_5 : f32 to vector<16x512xf32>
    %7 = arith.maximumf %5, %6 : vector<16x512xf32>
    %8 = arith.truncf %7 : vector<16x512xf32> to vector<16x512xbf16>
    %c0_6 = arith.constant 0 : index
    %c0_7 = arith.constant 0 : index
    %9 = vector.load %arg4[%c0_6, %c0_7] : memref<512x384xbf16, #tpu.memory_space<vmem>>, vector<512x384xbf16>
    %cst_8 = arith.constant dense<0.000000e+00> : vector<16x384xf32>
    %10 = tpu.matmul %8, %9, %cst_8 {dimension_numbers = #tpu.dot_dimension_numbers<[1], [0], [0], [1], [0, 0, 1, 1], [], []>} : vector<16x512xbf16>, vector<512x384xbf16>, vector<16x384xf32> -> vector<16x384xf32>
    %c0_9 = arith.constant 0 : index
    %c0_10 = arith.constant 0 : index
    %11 = vector.load %arg5[%c0_9, %c0_10] : memref<1x384xf32, #tpu.memory_space<vmem>>, vector<1x384xf32>
    %12 = vector.broadcast %11 : vector<1x384xf32> to vector<16x384xf32>
    %13 = arith.addf %10, %12 : vector<16x384xf32>
    %cst_11 = arith.constant 0.000000e+00 : f32
    %14 = vector.broadcast %cst_11 : f32 to vector<16x384xf32>
    %15 = arith.maximumf %13, %14 : vector<16x384xf32>
    %16 = arith.truncf %15 : vector<16x384xf32> to vector<16x384xbf16>
    %c0_12 = arith.constant 0 : index
    %c0_13 = arith.constant 0 : index
    %17 = vector.load %arg6[%c0_12, %c0_13] : memref<384x128xbf16, #tpu.memory_space<vmem>>, vector<384x128xbf16>
    %cst_14 = arith.constant dense<0.000000e+00> : vector<16x128xf32>
    %18 = tpu.matmul %16, %17, %cst_14 {dimension_numbers = #tpu.dot_dimension_numbers<[1], [0], [0], [1], [0, 0, 1, 1], [], []>} : vector<16x384xbf16>, vector<384x128xbf16>, vector<16x128xf32> -> vector<16x128xf32>
    %c0_15 = arith.constant 0 : index
    %c0_16 = arith.constant 0 : index
    %19 = vector.load %arg7[%c0_15, %c0_16] : memref<1x128xf32, #tpu.memory_space<vmem>>, vector<1x128xf32>
    %20 = vector.broadcast %19 : vector<1x128xf32> to vector<16x128xf32>
    %21 = arith.addf %18, %20 : vector<16x128xf32>
    %22 = math.tanh %21 : vector<16x128xf32>
    %cst_17 = arith.constant 1.000000e+00 : f32
    %23 = vector.broadcast %cst_17 : f32 to vector<16x128xf32>
    %24 = arith.mulf %23, %22 : vector<16x128xf32>
    %c0_18 = arith.constant 0 : index
    %c0_19 = arith.constant 0 : index
    %25 = vector.load %arg8[%c0_18, %c0_19] : memref<16x128xf32, #tpu.memory_space<vmem>>, vector<16x128xf32>
    tpu.vector_store %arg8[%c0_18, %c0_19], %24 {strides = array<i32>} : memref<16x128xf32, #tpu.memory_space<vmem>>, vector<16x128xf32>,
    return
  }
  func.func @transform_0(%arg0: i32) -> (i32, i32) {
    %c0_i32 = arith.constant 0 : i32
    %c0_i32_0 = arith.constant 0 : i32
    return %arg0, %c0_i32 : i32, i32
  }
  func.func @transform_1(%arg0: i32) -> (i32, i32) {
    %c0_i32 = arith.constant 0 : i32
    %c0_i32_0 = arith.constant 0 : i32
    %c0_i32_1 = arith.constant 0 : i32
    return %c0_i32, %c0_i32_0 : i32, i32
  }
  func.func @transform_2(%arg0: i32) -> (i32, i32) {
    %c0_i32 = arith.constant 0 : i32
    %c0_i32_0 = arith.constant 0 : i32
    %c0_i32_1 = arith.constant 0 : i32
    return %c0_i32, %c0_i32_0 : i32, i32
  }
  func.func @transform_3(%arg0: i32) -> (i32, i32) {
    %c0_i32 = arith.constant 0 : i32
    %c0_i32_0 = arith.constant 0 : i32
    %c0_i32_1 = arith.constant 0 : i32
    return %c0_i32, %c0_i32_0 : i32, i32
  }
  func.func @transform_4(%arg0: i32) -> (i32, i32) {
    %c0_i32 = arith.constant 0 : i32
    %c0_i32_0 = arith.constant 0 : i32
    %c0_i32_1 = arith.constant 0 : i32
    return %c0_i32, %c0_i32_0 : i32, i32
  }
  func.func @transform_5(%arg0: i32) -> (i32, i32) {
    %c0_i32 = arith.constant 0 : i32
    %c0_i32_0 = arith.constant 0 : i32
    %c0_i32_1 = arith.constant 0 : i32
    return %c0_i32, %c0_i32_0 : i32, i32
  }
  func.func @transform_6(%arg0: i32) -> (i32, i32) {
    %c0_i32 = arith.constant 0 : i32
    %c0_i32_0 = arith.constant 0 : i32
    %c0_i32_1 = arith.constant 0 : i32
    return %c0_i32, %c0_i32_0 : i32, i32
  }
  func.func @transform_7(%arg0: i32) -> (i32, i32) {
    %c0_i32 = arith.constant 0 : i32
    %c0_i32_0 = arith.constant 0 : i32
    return %arg0, %c0_i32 : i32, i32
  }
}

</mosaic_0001>

<bundles_post_ra>
// kernel: tpu_custom_call.1
= control target key start
LH: loop header
LB: loop body
LE: loop exit
PB: predicated region body
PF: predicated region fallthrough
CT: control target
= control target key end

     0   :  { %12 = vsyncpa [#allocation3], 0  ;;  %s4559_s0 = inlined_call_operand.hbm [shape: bf16[16,1024], index: 0, kind: input, shape index: {}]   ;;  %s4560_s1 = inlined_call_operand.hbm [shape: bf16[1024,512], index: 1, kind: input, shape index: {}]   ;;  %s4561_s2 = inlined_call_operand.vmem [shape: f32[1,512], index: 2, kind: input, shape index: {}]   ;;  %s4562_s3 = inlined_call_operand.hbm [shape: bf16[512,384], index: 3, kind: input, shape index: {}]   ;;  %s4563_s4 = inlined_call_operand.vmem [shape: f32[1,384], index: 4, kind: input, shape index: {}]   ;;  %s4564_s5 = inlined_call_operand.hbm [shape: bf16[384,128], index: 5, kind: input, shape index: {}]   ;;  %s4565_s6 = inlined_call_operand.vmem [shape: f32[1,128], index: 6, kind: input, shape index: {}]   ;;  %s4566_s7 = inlined_call_operand.hbm [shape: f32[16,128], index: 7, kind: output, shape index: {}]  }
   0x1   :  { %13 = vsyncpa [#allocation6], 0 }
   0x2   :  { %14 = vsyncpa [#allocation9], 0 }
   0x3   :  { %15 = vsyncpa [#allocation4], 0  ;;  %s4378_s24 = smov [#allocation5]   ;;  %s4260_s28 = scalar_lea.hbm %s4560_s1, 32768 }
   0x4   :  { %s33_s25 = sshll.u32 %s4378_s24, 4  ;;  %p4261_p0 = scmp.ne.s32.totalorder %s4560_s1, %s4260_s28  ;;  %s34_s25 = int_to_ptr.vmem [resolvable:$true] %s33_s25 }
   0x5   :  { %p4264_p1 = scmp.lt.u32.totalorder %s4260_s28, %s4560_s1 }
   0x7   :  { %p4266_p2 = pnand %p4264_p1, %p4261_p0 }
   0x9   :  { %4269 = shalt.err (!%p4266_p2)
}
   0xa   :  { %s4270_s10 = scalar_lea.vmem %s34_s25, 32768  ;;  %p4275_p4 = scmp.lt.s32.totalorder %s34_s25, %s34_s25 }
   0xb   :  { %p4271_p3 = scmp.ne.s32.totalorder %s34_s25, %s4270_s10  ;;  %p4276_p5 = scmp.lt.s32.totalorder %s4270_s10, %s4270_s10 }
   0xd   :  { %p4277_p6 = por %p4276_p5, %p4275_p4 }
   0xf   :  { %p4278_p7 = pnand %p4277_p6, %p4271_p3 }
  0x11   :  { %4281 = shalt.err (!%p4278_p7)
}
  0x12   :  { %s4379_s11 = smov 256   ;;  %s4380_s12 = smov 16  }
  0x13   :  { %39 = dma.hbm_to_vmem [thread:$0]  %s4560_s1, 32768, %s34_s25, [#allocation6], %s4379_s11, %s4379_s11, %s4380_s12  }
  0x14   :  { %s4381_s15 = smov [#allocation2]   ;;  %s4282_s19 = scalar_lea.hbm %s4559_s0, 1024 }
  0x15   :  { %s21_s16 = sshll.u32 %s4381_s15, 4  ;;  %p4283_p8 = scmp.ne.s32.totalorder %s4559_s0, %s4282_s19  ;;  %s22_s16 = int_to_ptr.vmem [resolvable:$true] %s21_s16 }
  0x16   :  { %p4286_p9 = scmp.lt.u32.totalorder %s4282_s19, %s4559_s0 }
  0x18   :  { %p4288_p10 = pnand %p4286_p9, %p4283_p8 }
  0x1a   :  { %4291 = shalt.err (!%p4288_p10)
}
  0x1b   :  { %s4292_s24 = scalar_lea.vmem %s22_s16, 1024  ;;  %p4297_p12 = scmp.lt.s32.totalorder %s22_s16, %s22_s16 }
  0x1c   :  { %p4293_p11 = scmp.ne.s32.totalorder %s22_s16, %s4292_s24  ;;  %p4298_p13 = scmp.lt.s32.totalorder %s4292_s24, %s4292_s24 }
  0x1e   :  { %p4299_p0 = por %p4298_p13, %p4297_p12 }
  0x20   :  { %p4300_p1 = pnand %p4299_p0, %p4293_p11 }
  0x22   :  { %4303 = shalt.err (!%p4300_p1)
}
  0x23   :  { %s4382_s1 = smov 512   ;;  %s4383_s25 = smov 32  }
  0x24   :  { %27 = dma.hbm_to_vmem [thread:$0]  %s4559_s0, 1024, %s22_s16, [#allocation3], %s4382_s1, %s4382_s1, %s4383_s25  }
  0x25   :  { %s4384_s28 = smov [#allocation7]   ;;  %s4304_s9 = scalar_lea.hbm %s4562_s3, 12288 }
  0x26   :  { %s47_s29 = sshll.u32 %s4384_s28, 4  ;;  %p4305_p2 = scmp.ne.s32.totalorder %s4562_s3, %s4304_s9  ;;  %s48_s29 = int_to_ptr.vmem [resolvable:$true] %s47_s29 }
  0x27   :  { %p4308_p3 = scmp.lt.u32.totalorder %s4304_s9, %s4562_s3 }
  0x29   :  { %p4310_p4 = pnand %p4308_p3, %p4305_p2 }
  0x2b   :  { %4313 = shalt.err (!%p4310_p4)
}
  0x2c   :  { %s4314_s14 = scalar_lea.vmem %s48_s29, 12288  ;;  %p4319_p6 = scmp.lt.s32.totalorder %s48_s29, %s48_s29 }
  0x2d   :  { %p4315_p5 = scmp.ne.s32.totalorder %s48_s29, %s4314_s14  ;;  %p4320_p7 = scmp.lt.s32.totalorder %s4314_s14, %s4314_s14 }
  0x2f   :  { %p4321_p8 = por %p4320_p7, %p4319_p6 }
  0x31   :  { %p4322_p9 = pnand %p4321_p8, %p4315_p5 }
  0x33   :  { %4325 = shalt.err (!%p4322_p9)
}
  0x34   :  { %s4385_s0 = smov 192   ;;  %s4386_s15 = smov 12  }
  0x35   :  { %53 = dma.hbm_to_vmem [thread:$0]  %s4562_s3, 12288, %s48_s29, [#allocation6], %s4385_s0, %s4385_s0, %s4386_s15  }
  0x36   :  { %s4387_s18 = smov [#allocation8]   ;;  %s4326_s22 = scalar_lea.hbm %s4564_s5, 3072 }
  0x37   :  { %s61_s19 = sshll.u32 %s4387_s18, 4  ;;  %p4327_p10 = scmp.ne.s32.totalorder %s4564_s5, %s4326_s22  ;;  %s62_s19 = int_to_ptr.vmem [resolvable:$true] %s61_s19 }
  0x38   :  { %p4330_p11 = scmp.lt.u32.totalorder %s4326_s22, %s4564_s5 }
  0x3a   :  { %p4332_p12 = pnand %p4330_p11, %p4327_p10 }
  0x3c   :  { %4335 = shalt.err (!%p4332_p12)
}
  0x3d   :  { %s4336_s26 = scalar_lea.vmem %s62_s19, 3072  ;;  %p4341_p0 = scmp.lt.s32.totalorder %s62_s19, %s62_s19 }
  0x3e   :  { %p4337_p13 = scmp.ne.s32.totalorder %s62_s19, %s4336_s26  ;;  %p4342_p1 = scmp.lt.s32.totalorder %s4336_s26, %s4336_s26 }
  0x40   :  { %p4343_p2 = por %p4342_p1, %p4341_p0 }
  0x42   :  { %p4344_p3 = pnand %p4343_p2, %p4337_p13 }
  0x44   :  { %4347 = shalt.err (!%p4344_p3)
}
  0x45   :  { %s4388_s3 = smov 64   ;;  %s4389_s27 = smov 4  }
  0x46   :  { %67 = dma.hbm_to_vmem [thread:$0]  %s4564_s5, 3072, %s62_s19, [#allocation9], %s4388_s3, %s4388_s3, %s4389_s27  }
  0x47   :  { %4370 = dma.done.wait [#allocation3], 1024  }
  0x48   :  { %4371 = vsyncadd [#allocation3], 4294966272 }
  0x49   :  { %4372 = dma.done.wait [#allocation6], 45056  }
  0x4a   :  { %4373 = vsyncadd [#allocation6], 4294922240 }
  0x4b   :  { %4374 = dma.done.wait [#allocation9], 3072  }
  0x4c   :  { %4375 = vsyncadd [#allocation9], 4294964224  ;;  %v3720_v0 = vld [vmem:[#allocation5 + $0x4] ss:$16 sps:$4 sm:$0xff]   ;;  %v3722_v1 = vld [vmem:[#allocation5 + $0xc] ss:$16 sps:$4 sm:$0xff]  }
  0x4d   :  { %1689 = vmatprep.subr.bf16.mxu0 %v3720_v0  ;;  %v3724_v2 = vld [vmem:[#allocation5] ss:$16 sps:$4 sm:$0xff]   ;;  %v3725_v3 = vld [vmem:[#allocation5 + $0x8] ss:$16 sps:$4 sm:$0xff]   ;;  %1861 = vmatprep.subr.bf16.mxu1 %v3722_v1  ;;  %v3726_v4 = vld [vmem:[#allocation5 + $0x24] ss:$16 sps:$4 sm:$0xff]  }
  0x4e   :  { %1690 = vmatpush1.bf16.msra.mxu0 %v3724_v2  ;;  %1862 = vmatpush1.bf16.msra.mxu1 %v3725_v3  ;;  %v3728_v5 = vld [vmem:[#allocation5 + $0x2c] ss:$16 sps:$4 sm:$0xff]   ;;  %v3730_v6 = vld [vmem:[#allocation5 + $0x20] ss:$16 sps:$4 sm:$0xff]   ;;  %v3731_v7 = vld [vmem:[#allocation5 + $0x28] ss:$16 sps:$4 sm:$0xff]  }
  0x4f   :  { %1691 = vmatprep.subr.bf16.mxu0 %v3726_v4  ;;  %1863 = vmatprep.subr.bf16.mxu1 %v3728_v5  ;;  %v3732_v8 = vld [vmem:[#allocation5 + $0x44] ss:$16 sps:$4 sm:$0xff]   ;;  %v3734_v9 = vld [vmem:[#allocation5 + $0x4c] ss:$16 sps:$4 sm:$0xff]   ;;  %v3736_v10 = vld [vmem:[#allocation5 + $0x40] ss:$16 sps:$4 sm:$0xff]  }
  0x50   :  { %v3737_v11 = vld [vmem:[#allocation5 + $0x48] ss:$16 sps:$4 sm:$0xff]   ;;  %v3738_v12 = vld [vmem:[#allocation5 + $0x64] ss:$16 sps:$4 sm:$0xff]   ;;  %v3740_v13 = vld [vmem:[#allocation5 + $0x6c] ss:$16 sps:$4 sm:$0xff]  }
  0x51   :  { %v3742_v14 = vld [vmem:[#allocation5 + $0x60] ss:$16 sps:$4 sm:$0xff]   ;;  %v3743_v15 = vld [vmem:[#allocation5 + $0x68] ss:$16 sps:$4 sm:$0xff]   ;;  %v3744_v16 = vld [vmem:[#allocation5 + $0x84] ss:$16 sps:$4 sm:$0xff]  }
  0x52   :  { %1692 = vmatpush1.bf16.msra.mxu0 %v3730_v6  ;;  %1864 = vmatpush1.bf16.msra.mxu1 %v3731_v7  ;;  %v3746_v17 = vld [vmem:[#allocation5 + $0x8c] ss:$16 sps:$4 sm:$0xff]   ;;  %v3748_v18 = vld [vmem:[#allocation5 + $0x80] ss:$16 sps:$4 sm:$0xff]   ;;  %v3749_v19 = vld [vmem:[#allocation5 + $0x88] ss:$16 sps:$4 sm:$0xff]  }
  0x53   :  { %1693 = vmatprep.subr.bf16.mxu0 %v3732_v8  ;;  %1865 = vmatprep.subr.bf16.mxu1 %v3734_v9  ;;  %v3750_v20 = vld [vmem:[#allocation5 + $0xa4] ss:$16 sps:$4 sm:$0xff]   ;;  %v3752_v21 = vld [vmem:[#allocation5 + $0xac] ss:$16 sps:$4 sm:$0xff]   ;;  %v3754_v22 = vld [vmem:[#allocation5 + $0xa0] ss:$16 sps:$4 sm:$0xff]  }
  0x54   :  { %v3755_v23 = vld [vmem:[#allocation5 + $0xa8] ss:$16 sps:$4 sm:$0xff]   ;;  %v3756_v24 = vld [vmem:[#allocation5 + $0xc4] ss:$16 sps:$4 sm:$0xff]   ;;  %v3758_v25 = vld [vmem:[#allocation5 + $0xcc] ss:$16 sps:$4 sm:$0xff]  }
  0x55   :  { %v3760_v26 = vld [vmem:[#allocation5 + $0xc0] ss:$16 sps:$4 sm:$0xff]   ;;  %v3761_v27 = vld [vmem:[#allocation5 + $0xc8] ss:$16 sps:$4 sm:$0xff]   ;;  %v3762_v28 = vld [vmem:[#allocation5 + $0xe4] ss:$16 sps:$4 sm:$0xff]  }
  0x56   :  { %1694 = vmatpush1.bf16.msra.mxu0 %v3736_v10  ;;  %1866 = vmatpush1.bf16.msra.mxu1 %v3737_v11  ;;  %v3764_v29 = vld [vmem:[#allocation5 + $0xec] ss:$16 sps:$4 sm:$0xff]   ;;  %v3766_v30 = vld [vmem:[#allocation5 + $0xe0] ss:$16 sps:$4 sm:$0xff]   ;;  %v3767_v31 = vld [vmem:[#allocation5 + $0xe8] ss:$16 sps:$4 sm:$0xff]  }
  0x57   :  { %1695 = vmatprep.subr.bf16.mxu0 %v3738_v12  ;;  %1867 = vmatprep.subr.bf16.mxu1 %v3740_v13  ;;  %v3768_v32 = vld [vmem:[#allocation5 + $0x104] ss:$16 sps:$4 sm:$0xff]   ;;  %v3770_v33 = vld [vmem:[#allocation5 + $0x10c] ss:$16 sps:$4 sm:$0xff]   ;;  %v3772_v34 = vld [vmem:[#allocation5 + $0x100] ss:$16 sps:$4 sm:$0xff]  }
  0x58   :  { %v3773_v35 = vld [vmem:[#allocation5 + $0x108] ss:$16 sps:$4 sm:$0xff]   ;;  %v3774_v36 = vld [vmem:[#allocation5 + $0x124] ss:$16 sps:$4 sm:$0xff]   ;;  %v3776_v37 = vld [vmem:[#allocation5 + $0x12c] ss:$16 sps:$4 sm:$0xff]  }
  0x59   :  { %v3778_v38 = vld [vmem:[#allocation5 + $0x120] ss:$16 sps:$4 sm:$0xff]   ;;  %v3779_v39 = vld [vmem:[#allocation5 + $0x128] ss:$16 sps:$4 sm:$0xff]   ;;  %v3780_v40 = vld [vmem:[#allocation5 + $0x144] ss:$16 sps:$4 sm:$0xff]  }
  0x5a   :  { %1696 = vmatpush1.bf16.msra.mxu0 %v3742_v14  ;;  %1868 = vmatpush1.bf16.msra.mxu1 %v3743_v15  ;;  %v3782_v41 = vld [vmem:[#allocation5 + $0x14c] ss:$16 sps:$4 sm:$0xff]   ;;  %v3784_v42 = vld [vmem:[#allocation5 + $0x140] ss:$16 sps:$4 sm:$0xff]   ;;  %v3785_v43 = vld [vmem:[#allocation5 + $0x148] ss:$16 sps:$4 sm:$0xff]  }
  0x5b   :  { %1697 = vmatprep.subr.bf16.mxu0 %v3744_v16  ;;  %1869 = vmatprep.subr.bf16.mxu1 %v3746_v17  ;;  %v3786_v44 = vld [vmem:[#allocation5 + $0x164] ss:$16 sps:$4 sm:$0xff]   ;;  %v3788_v45 = vld [vmem:[#allocation5 + $0x16c] ss:$16 sps:$4 sm:$0xff]   ;;  %v3790_v48 = vld [vmem:[#allocation5 + $0x160] ss:$16 sps:$4 sm:$0xff]  }
  0x5c   :  { %v83_v46 = vld [vmem:[#allocation2] sm:$0xff]  ;;  %v3791_v49 = vld [vmem:[#allocation5 + $0x168] ss:$16 sps:$4 sm:$0xff]   ;;  %v3794_v52 = vld [vmem:[#allocation5 + $0x18c] ss:$16 sps:$4 sm:$0xff]   ;;  %vm4391_vm0 = vmmov 0  }
  0x5d   :  { %v87_v47 = vld [vmem:[#allocation2 + $0x20] sm:$0xff]  ;;  %v3797_v54 = vld [vmem:[#allocation5 + $0x188] ss:$16 sps:$4 sm:$0xff]   ;;  %v3800_v56 = vld [vmem:[#allocation5 + $0x1ac] ss:$16 sps:$4 sm:$0xff]   ;;  %s4392_s10 = smov [#allocation10]  }
  0x5e   :  { %1698 = vmatpush1.bf16.msra.mxu0 %v3748_v18  ;;  %1870 = vmatpush1.bf16.msra.mxu1 %v3749_v19  ;;  %v3184_v50 = vcombine.high %v83_v46, %v87_v47  ;;  %v3792_v51 = vld [vmem:[#allocation5 + $0x184] ss:$16 sps:$4 sm:$0xff]   ;;  %v3796_v53 = vld [vmem:[#allocation5 + $0x180] ss:$16 sps:$4 sm:$0xff]   ;;  %v3803_v58 = vld [vmem:[#allocation5 + $0x1a8] ss:$16 sps:$4 sm:$0xff]   ;;  %v3183_v5 = vcombine.low %v83_v46, %v87_v47 }
  0x5f   :  { %1699 = vmatprep.subr.bf16.mxu0 %v3750_v20  ;;  %1871 = vmatprep.subr.bf16.mxu1 %v3752_v21  ;;  %v3798_v55 = vld [vmem:[#allocation5 + $0x1a4] ss:$16 sps:$4 sm:$0xff]   ;;  %v3802_v57 = vld [vmem:[#allocation5 + $0x1a0] ss:$16 sps:$4 sm:$0xff]   ;;  %v3806_v60 = vld [vmem:[#allocation5 + $0x1cc] ss:$16 sps:$4 sm:$0xff]  }
  0x60   :  { %1721 = vmatprep.mubr.bf16.mxu0 %v3184_v50  ;;  %1893 = vmatprep.mubr.bf16.mxu1 %v3184_v50  ;;  %v3804_v59 = vld [vmem:[#allocation5 + $0x1c4] ss:$16 sps:$4 sm:$0xff]   ;;  %v3808_v61 = vld [vmem:[#allocation5 + $0x1c0] ss:$16 sps:$4 sm:$0xff]   ;;  %v3809_v62 = vld [vmem:[#allocation5 + $0x1c8] ss:$16 sps:$4 sm:$0xff]  }
  0x61   :  { %v3810_v63 = vld [vmem:[#allocation5 + $0x1e4] ss:$16 sps:$4 sm:$0xff]   ;;  %v3812_v0 = vld [vmem:[#allocation5 + $0x1ec] ss:$16 sps:$4 sm:$0xff]   ;;  %v3814_v1 = vld [vmem:[#allocation5 + $0x1e0] ss:$16 sps:$4 sm:$0xff]  }
  0x62   :  { %1700 = vmatpush1.bf16.msra.mxu0 %v3754_v22  ;;  %1872 = vmatpush1.bf16.msra.mxu1 %v3755_v23  ;;  %v3815_v2 = vld [vmem:[#allocation5 + $0x1e8] ss:$16 sps:$4 sm:$0xff]   ;;  %v3818_v3 = vld [vmem:[#allocation5 + $0x204] ss:$16 sps:$4 sm:$0xff]   ;;  %v3821_v4 = vld [vmem:[#allocation5 + $0x20c] ss:$16 sps:$4 sm:$0xff]  }
  0x63   :  { %1701 = vmatprep.subr.bf16.mxu0 %v3756_v24  ;;  %1873 = vmatprep.subr.bf16.mxu1 %v3758_v25  ;;  %v3816_v6 = vld [vmem:[#allocation5 + $0x200] ss:$16 sps:$4 sm:$0xff]   ;;  %v3819_v7 = vld [vmem:[#allocation5 + $0x208] ss:$16 sps:$4 sm:$0xff]   ;;  %v3824_v8 = vld [vmem:[#allocation5 + $0x224] ss:$16 sps:$4 sm:$0xff]  }
  0x64   :  { %v3827_v9 = vld [vmem:[#allocation5 + $0x22c] ss:$16 sps:$4 sm:$0xff]   ;;  %v3822_v10 = vld [vmem:[#allocation5 + $0x220] ss:$16 sps:$4 sm:$0xff]   ;;  %v3825_v11 = vld [vmem:[#allocation5 + $0x228] ss:$16 sps:$4 sm:$0xff]  }
  0x65   :  { %v3830_v12 = vld [vmem:[#allocation5 + $0x244] ss:$16 sps:$4 sm:$0xff]   ;;  %v3833_v13 = vld [vmem:[#allocation5 + $0x24c] ss:$16 sps:$4 sm:$0xff]   ;;  %v3828_v14 = vld [vmem:[#allocation5 + $0x240] ss:$16 sps:$4 sm:$0xff]  }
  0x66   :  { %1702 = vmatpush1.bf16.msra.mxu0 %v3760_v26  ;;  %1874 = vmatpush1.bf16.msra.mxu1 %v3761_v27  ;;  %v3831_v15 = vld [vmem:[#allocation5 + $0x248] ss:$16 sps:$4 sm:$0xff]   ;;  %v3836_v16 = vld [vmem:[#allocation5 + $0x264] ss:$16 sps:$4 sm:$0xff]   ;;  %v3839_v17 = vld [vmem:[#allocation5 + $0x26c] ss:$16 sps:$4 sm:$0xff]  }
  0x67   :  { %1703 = vmatprep.subr.bf16.mxu0 %v3762_v28  ;;  %1875 = vmatprep.subr.bf16.mxu1 %v3764_v29  ;;  %v3834_v18 = vld [vmem:[#allocation5 + $0x260] ss:$16 sps:$4 sm:$0xff]   ;;  %v3837_v19 = vld [vmem:[#allocation5 + $0x268] ss:$16 sps:$4 sm:$0xff]   ;;  %v3842_v20 = vld [vmem:[#allocation5 + $0x284] ss:$16 sps:$4 sm:$0xff]  }
  0x68   :  { %v3845_v21 = vld [vmem:[#allocation5 + $0x28c] ss:$16 sps:$4 sm:$0xff]   ;;  %v3840_v22 = vld [vmem:[#allocation5 + $0x280] ss:$16 sps:$4 sm:$0xff]   ;;  %v3843_v23 = vld [vmem:[#allocation5 + $0x288] ss:$16 sps:$4 sm:$0xff]  }
  0x69   :  { %v3848_v24 = vld [vmem:[#allocation5 + $0x2a4] ss:$16 sps:$4 sm:$0xff]   ;;  %v3851_v25 = vld [vmem:[#allocation5 + $0x2ac] ss:$16 sps:$4 sm:$0xff]   ;;  %v3846_v26 = vld [vmem:[#allocation5 + $0x2a0] ss:$16 sps:$4 sm:$0xff]  }
  0x6a   :  { %1704 = vmatpush1.bf16.msra.mxu0 %v3766_v30  ;;  %1876 = vmatpush1.bf16.msra.mxu1 %v3767_v31  ;;  %v3849_v27 = vld [vmem:[#allocation5 + $0x2a8] ss:$16 sps:$4 sm:$0xff]   ;;  %v3854_v28 = vld [vmem:[#allocation5 + $0x2c4] ss:$16 sps:$4 sm:$0xff]   ;;  %v3857_v29 = vld [vmem:[#allocation5 + $0x2cc] ss:$16 sps:$4 sm:$0xff]  }
  0x6b   :  { %1705 = vmatprep.subr.bf16.mxu0 %v3768_v32  ;;  %1877 = vmatprep.subr.bf16.mxu1 %v3770_v33  ;;  %v4483_v30 = vld [vmem:[#allocation2 + $0x8] sm:$0xff]  ;;  %v3852_v32 = vld [vmem:[#allocation5 + $0x2c0] ss:$16 sps:$4 sm:$0xff]   ;;  %v3878_v47 = vld [vmem:[#allocation5 + $0x344] ss:$16 sps:$4 sm:$0xff]   ;;  %s3169_s11 = sshll.u32 %s4392_s10, 4  ;;  %s3170_s11 = int_to_ptr.vmem [resolvable:$true] %s3169_s11 }
  0x6c   :  { %v4485_v31 = vld [vmem:[#allocation2 + $0x28] sm:$0xff]  ;;  %s4348_s12 = scalar_lea.vmem %s3170_s11, 256  ;;  %p4353_p5 = scmp.lt.s32.totalorder %s3170_s11, %s3170_s11 }
  0x6d   :  { %v3855_v33 = vld [vmem:[#allocation5 + $0x2c8] ss:$16 sps:$4 sm:$0xff]   ;;  %p4349_p4 = scmp.ne.s32.totalorder %s3170_s11, %s4348_s12  ;;  %p4354_p6 = scmp.lt.s32.totalorder %s4348_s12, %s4348_s12 }
  0x6e   :  { %1706 = vmatpush1.bf16.msra.mxu0 %v3772_v34  ;;  %1878 = vmatpush1.bf16.msra.mxu1 %v3773_v35  ;;  %v3186_v34 = vcombine.high %v4483_v30, %v4485_v31  ;;  %v3860_v35 = vld [vmem:[#allocation5 + $0x2e4] ss:$16 sps:$4 sm:$0xff]   ;;  %v3873_v46 = vld [vmem:[#allocation5 + $0x328] ss:$16 sps:$4 sm:$0xff]  }
  0x6f   :  { %1707 = vmatprep.subr.bf16.mxu0 %v3774_v36  ;;  %1879 = vmatprep.subr.bf16.mxu1 %v3776_v37  ;;  %v3863_v36 = vld [vmem:[#allocation5 + $0x2ec] ss:$16 sps:$4 sm:$0xff]   ;;  %v3858_v37 = vld [vmem:[#allocation5 + $0x2e0] ss:$16 sps:$4 sm:$0xff]   ;;  %v3879_v50 = vld [vmem:[#allocation5 + $0x348] ss:$16 sps:$4 sm:$0xff]   ;;  %p4355_p7 = por %p4354_p6, %p4353_p5 }
  0x71   :  { %p4356_p8 = pnand %p4355_p7, %p4349_p4 }
  0x72   :  { %1708 = vmatpush1.bf16.msra.mxu0 %v3778_v38  ;;  %1880 = vmatpush1.bf16.msra.mxu1 %v3779_v39  ;;  %v3861_v38 = vld [vmem:[#allocation5 + $0x2e8] ss:$16 sps:$4 sm:$0xff]   ;;  %v3866_v39 = vld [vmem:[#allocation5 + $0x304] ss:$16 sps:$4 sm:$0xff]  }
  0x73   :  { %1709 = vmatprep.subr.bf16.mxu0 %v3780_v40  ;;  %1881 = vmatprep.subr.bf16.mxu1 %v3782_v41  ;;  %v3869_v40 = vld [vmem:[#allocation5 + $0x30c] ss:$16 sps:$4 sm:$0xff]   ;;  %v3864_v41 = vld [vmem:[#allocation5 + $0x300] ss:$16 sps:$4 sm:$0xff]  }
  0x76   :  { %1710 = vmatpush1.bf16.msra.mxu0 %v3784_v42  ;;  %1882 = vmatpush1.bf16.msra.mxu1 %v3785_v43  ;;  %v3867_v42 = vld [vmem:[#allocation5 + $0x308] ss:$16 sps:$4 sm:$0xff]   ;;  %v3872_v43 = vld [vmem:[#allocation5 + $0x324] ss:$16 sps:$4 sm:$0xff]  }
  0x77   :  { %1711 = vmatprep.subr.bf16.mxu0 %v3786_v44  ;;  %1883 = vmatprep.subr.bf16.mxu1 %v3788_v45  ;;  %v3875_v44 = vld [vmem:[#allocation5 + $0x32c] ss:$16 sps:$4 sm:$0xff]   ;;  %v3870_v45 = vld [vmem:[#allocation5 + $0x320] ss:$16 sps:$4 sm:$0xff]  }
  0x7a   :  { %1712 = vmatpush1.bf16.msra.mxu0 %v3790_v48  ;;  %1884 = vmatpush1.bf16.msra.mxu1 %v3791_v49  ;;  %v3881_v48 = vld [vmem:[#allocation5 + $0x34c] ss:$16 sps:$4 sm:$0xff]   ;;  %v3876_v49 = vld [vmem:[#allocation5 + $0x340] ss:$16 sps:$4 sm:$0xff]  }
  0x7b   :  { %1713 = vmatprep.subr.bf16.mxu0 %v3792_v51  ;;  %1885 = vmatprep.subr.bf16.mxu1 %v3794_v52  ;;  %v3884_v51 = vld [vmem:[#allocation5 + $0x364] ss:$16 sps:$4 sm:$0xff]   ;;  %v3887_v52 = vld [vmem:[#allocation5 + $0x36c] ss:$16 sps:$4 sm:$0xff]  }
  0x7e   :  { %1714 = vmatpush1.bf16.msra.mxu0 %v3796_v53  ;;  %1886 = vmatpush1.bf16.msra.mxu1 %v3797_v54  ;;  %v3882_v53 = vld [vmem:[#allocation5 + $0x360] ss:$16 sps:$4 sm:$0xff]   ;;  %v3885_v54 = vld [vmem:[#allocation5 + $0x368] ss:$16 sps:$4 sm:$0xff]  }
  0x7f   :  { %1715 = vmatprep.subr.bf16.mxu0 %v3798_v55  ;;  %1887 = vmatprep.subr.bf16.mxu1 %v3800_v56  ;;  %v3890_v55 = vld [vmem:[#allocation5 + $0x384] ss:$16 sps:$4 sm:$0xff]   ;;  %v3893_v56 = vld [vmem:[#allocation5 + $0x38c] ss:$16 sps:$4 sm:$0xff]  }
  0x82   :  { %1716 = vmatpush1.bf16.msra.mxu0 %v3802_v57  ;;  %1888 = vmatpush1.bf16.msra.mxu1 %v3803_v58  ;;  %v3888_v57 = vld [vmem:[#allocation5 + $0x380] ss:$16 sps:$4 sm:$0xff]   ;;  %v3891_v58 = vld [vmem:[#allocation5 + $0x388] ss:$16 sps:$4 sm:$0xff]  }
  0x83   :  { %1717 = vmatprep.subr.bf16.mxu0 %v3804_v59  ;;  %1889 = vmatprep.subr.bf16.mxu1 %v3806_v60  ;;  %v3896_v59 = vld [vmem:[#allocation5 + $0x3a4] ss:$16 sps:$4 sm:$0xff]   ;;  %v3899_v60 = vld [vmem:[#allocation5 + $0x3ac] ss:$16 sps:$4 sm:$0xff]  }
  0x86   :  { %1718 = vmatpush1.bf16.msra.mxu0 %v3808_v61  ;;  %1890 = vmatpush1.bf16.msra.mxu1 %v3809_v62  ;;  %v3894_v61 = vld [vmem:[#allocation5 + $0x3a0] ss:$16 sps:$4 sm:$0xff]   ;;  %v3897_v62 = vld [vmem:[#allocation5 + $0x3a8] ss:$16 sps:$4 sm:$0xff]  }
  0x87   :  { %1719 = vmatprep.subr.bf16.mxu0 %v3810_v63  ;;  %1891 = vmatprep.subr.bf16.mxu1 %v3812_v0  ;;  %v3902_v63 = vld [vmem:[#allocation5 + $0x3c4] ss:$16 sps:$4 sm:$0xff]   ;;  %v3905_v0 = vld [vmem:[#allocation5 + $0x3cc] ss:$16 sps:$4 sm:$0xff]  }
  0x8a   :  { %1720 = vmatpush1.bf16.msra.mxu0 %v3814_v1  ;;  %1892 = vmatpush1.bf16.msra.mxu1 %v3815_v2  ;;  %v3900_v1 = vld [vmem:[#allocation5 + $0x3c0] ss:$16 sps:$4 sm:$0xff]   ;;  %v3903_v2 = vld [vmem:[#allocation5 + $0x3c8] ss:$16 sps:$4 sm:$0xff]  }
  0x8b   :  { %1732 = vmatprep.subr.bf16.mxu0 %v3818_v3  ;;  %1904 = vmatprep.subr.bf16.mxu1 %v3821_v4  ;;  %v3908_v3 = vld [vmem:[#allocation5 + $0x3e4] ss:$16 sps:$4 sm:$0xff]   ;;  %v3911_v4 = vld [vmem:[#allocation5 + $0x3ec] ss:$16 sps:$4 sm:$0xff]  }
  0x8d   :  { %1722 = vmatmul.mubr.bf16.vlgmr.msra.gmra.mrb[0].mxu0 %v3183_v5  ;;  %1894 = vmatmul.mubr.bf16.vlgmr.msra.gmra.mrb[0].mxu1 %v3183_v5  ;;  %v3906_v5 = vld [vmem:[#allocation5 + $0x3e0] ss:$16 sps:$4 sm:$0xff]  }
  0x8e   :  { %1733 = vmatpush1.bf16.msra.mxu0 %v3816_v6  ;;  %1905 = vmatpush1.bf16.msra.mxu1 %v3819_v7  ;;  %v3909_v6 = vld [vmem:[#allocation5 + $0x3e8] ss:$16 sps:$4 sm:$0xff]   ;;  %v3914_v7 = vld [vmem:[#allocation5 + $0x404] ss:$16 sps:$4 sm:$0xff]  }
  0x8f   :  { %1734 = vmatprep.subr.bf16.mxu0 %v3824_v8  ;;  %1906 = vmatprep.subr.bf16.mxu1 %v3827_v9  ;;  %v3917_v8 = vld [vmem:[#allocation5 + $0x40c] ss:$16 sps:$4 sm:$0xff]   ;;  %v3185_v9 = vcombine.low %v4483_v30, %v4485_v31  ;;  %v3939_v30 = vld [vmem:[#allocation5 + $0x488] ss:$16 sps:$4 sm:$0xff]   ;;  %v3944_v31 = vld [vmem:[#allocation5 + $0x4a4] ss:$16 sps:$4 sm:$0xff]  }
  0x90   :  { %1764 = vmatprep.mubr.bf16.mxu0 %v3186_v34  ;;  %1936 = vmatprep.mubr.bf16.mxu1 %v3186_v34  ;;  %v3945_v34 = vld [vmem:[#allocation5 + $0x4a8] ss:$16 sps:$4 sm:$0xff]  }
  0x92   :  { %1735 = vmatpush1.bf16.msra.mxu0 %v3822_v10  ;;  %1907 = vmatpush1.bf16.msra.mxu1 %v3825_v11  ;;  %v3912_v10 = vld [vmem:[#allocation5 + $0x400] ss:$16 sps:$4 sm:$0xff]   ;;  %v3915_v11 = vld [vmem:[#allocation5 + $0x408] ss:$16 sps:$4 sm:$0xff]  }
  0x93   :  { %1736 = vmatprep.subr.bf16.mxu0 %v3830_v12  ;;  %1908 = vmatprep.subr.bf16.mxu1 %v3833_v13  ;;  %v3920_v12 = vld [vmem:[#allocation5 + $0x424] ss:$16 sps:$4 sm:$0xff]   ;;  %v3923_v13 = vld [vmem:[#allocation5 + $0x42c] ss:$16 sps:$4 sm:$0xff]  }
  0x96   :  { %1737 = vmatpush1.bf16.msra.mxu0 %v3828_v14  ;;  %1909 = vmatpush1.bf16.msra.mxu1 %v3831_v15  ;;  %v4491_v14 = vld [vmem:[#allocation2 + $0x10] sm:$0xff] }
  0x97   :  { %1738 = vmatprep.subr.bf16.mxu0 %v3836_v16  ;;  %1910 = vmatprep.subr.bf16.mxu1 %v3839_v17  ;;  %v4493_v15 = vld [vmem:[#allocation2 + $0x30] sm:$0xff] }
  0x98   :  { %v3188_v16 = vcombine.high %v4491_v14, %v4493_v15  ;;  %v3918_v17 = vld [vmem:[#allocation5 + $0x420] ss:$16 sps:$4 sm:$0xff]  }
  0x9a   :  { %1739 = vmatpush1.bf16.msra.mxu0 %v3834_v18  ;;  %1911 = vmatpush1.bf16.msra.mxu1 %v3837_v19  ;;  %v3921_v18 = vld [vmem:[#allocation5 + $0x428] ss:$16 sps:$4 sm:$0xff]   ;;  %v3926_v19 = vld [vmem:[#allocation5 + $0x444] ss:$16 sps:$4 sm:$0xff]  }
  0x9b   :  { %1740 = vmatprep.subr.bf16.mxu0 %v3842_v20  ;;  %1912 = vmatprep.subr.bf16.mxu1 %v3845_v21  ;;  %v3929_v20 = vld [vmem:[#allocation5 + $0x44c] ss:$16 sps:$4 sm:$0xff]   ;;  %v3924_v21 = vld [vmem:[#allocation5 + $0x440] ss:$16 sps:$4 sm:$0xff]  }
  0x9e   :  { %1741 = vmatpush1.bf16.msra.mxu0 %v3840_v22  ;;  %1913 = vmatpush1.bf16.msra.mxu1 %v3843_v23  ;;  %v3927_v22 = vld [vmem:[#allocation5 + $0x448] ss:$16 sps:$4 sm:$0xff]   ;;  %v3932_v23 = vld [vmem:[#allocation5 + $0x464] ss:$16 sps:$4 sm:$0xff]  }
  0x9f   :  { %1742 = vmatprep.subr.bf16.mxu0 %v3848_v24  ;;  %1914 = vmatprep.subr.bf16.mxu1 %v3851_v25  ;;  %v3935_v24 = vld [vmem:[#allocation5 + $0x46c] ss:$16 sps:$4 sm:$0xff]   ;;  %v3930_v25 = vld [vmem:[#allocation5 + $0x460] ss:$16 sps:$4 sm:$0xff]  }
  0xa2   :  { %1743 = vmatpush1.bf16.msra.mxu0 %v3846_v26  ;;  %1915 = vmatpush1.bf16.msra.mxu1 %v3849_v27  ;;  %v3933_v26 = vld [vmem:[#allocation5 + $0x468] ss:$16 sps:$4 sm:$0xff]   ;;  %v3938_v27 = vld [vmem:[#allocation5 + $0x484] ss:$16 sps:$4 sm:$0xff]  }
  0xa3   :  { %1744 = vmatprep.subr.bf16.mxu0 %v3854_v28  ;;  %1916 = vmatprep.subr.bf16.mxu1 %v3857_v29  ;;  %v3941_v28 = vld [vmem:[#allocation5 + $0x48c] ss:$16 sps:$4 sm:$0xff]   ;;  %v3936_v29 = vld [vmem:[#allocation5 + $0x480] ss:$16 sps:$4 sm:$0xff]  }
  0xa6   :  { %1745 = vmatpush1.bf16.msra.mxu0 %v3852_v32  ;;  %1917 = vmatpush1.bf16.msra.mxu1 %v3855_v33  ;;  %v3947_v32 = vld [vmem:[#allocation5 + $0x4ac] ss:$16 sps:$4 sm:$0xff]   ;;  %v3942_v33 = vld [vmem:[#allocation5 + $0x4a0] ss:$16 sps:$4 sm:$0xff]  }
  0xa7   :  { %1746 = vmatprep.subr.bf16.mxu0 %v3860_v35  ;;  %1918 = vmatprep.subr.bf16.mxu1 %v3863_v36  ;;  %v3950_v35 = vld [vmem:[#allocation5 + $0x4c4] ss:$16 sps:$4 sm:$0xff]   ;;  %v3953_v36 = vld [vmem:[#allocation5 + $0x4cc] ss:$16 sps:$4 sm:$0xff]  }
  0xaa   :  { %1747 = vmatpush1.bf16.msra.mxu0 %v3858_v37  ;;  %1919 = vmatpush1.bf16.msra.mxu1 %v3861_v38  ;;  %v3948_v37 = vld [vmem:[#allocation5 + $0x4c0] ss:$16 sps:$4 sm:$0xff]   ;;  %v3951_v38 = vld [vmem:[#allocation5 + $0x4c8] ss:$16 sps:$4 sm:$0xff]  }
  0xab   :  { %1748 = vmatprep.subr.bf16.mxu0 %v3866_v39  ;;  %1920 = vmatprep.subr.bf16.mxu1 %v3869_v40  ;;  %v3956_v39 = vld [vmem:[#allocation5 + $0x4e4] ss:$16 sps:$4 sm:$0xff]   ;;  %v3959_v40 = vld [vmem:[#allocation5 + $0x4ec] ss:$16 sps:$4 sm:$0xff]  }
  0xae   :  { %1749 = vmatpush1.bf16.msra.mxu0 %v3864_v41  ;;  %1921 = vmatpush1.bf16.msra.mxu1 %v3867_v42  ;;  %v3954_v41 = vld [vmem:[#allocation5 + $0x4e0] ss:$16 sps:$4 sm:$0xff]   ;;  %v3957_v42 = vld [vmem:[#allocation5 + $0x4e8] ss:$16 sps:$4 sm:$0xff]  }
  0xaf   :  { %1750 = vmatprep.subr.bf16.mxu0 %v3872_v43  ;;  %1922 = vmatprep.subr.bf16.mxu1 %v3875_v44  ;;  %v3962_v43 = vld [vmem:[#allocation5 + $0x504] ss:$16 sps:$4 sm:$0xff]   ;;  %v3965_v44 = vld [vmem:[#allocation5 + $0x50c] ss:$16 sps:$4 sm:$0xff]  }
  0xb2   :  { %1751 = vmatpush1.bf16.msra.mxu0 %v3870_v45  ;;  %1923 = vmatpush1.bf16.msra.mxu1 %v3873_v46  ;;  %v3960_v45 = vld [vmem:[#allocation5 + $0x500] ss:$16 sps:$4 sm:$0xff]   ;;  %v3963_v46 = vld [vmem:[#allocation5 + $0x508] ss:$16 sps:$4 sm:$0xff]  }
  0xb3   :  { %1752 = vmatprep.subr.bf16.mxu0 %v3878_v47  ;;  %1924 = vmatprep.subr.bf16.mxu1 %v3881_v48  ;;  %v3968_v47 = vld [vmem:[#allocation5 + $0x524] ss:$16 sps:$4 sm:$0xff]   ;;  %v3971_v48 = vld [vmem:[#allocation5 + $0x52c] ss:$16 sps:$4 sm:$0xff]  }
  0xb6   :  { %1753 = vmatpush1.bf16.msra.mxu0 %v3876_v49  ;;  %1925 = vmatpush1.bf16.msra.mxu1 %v3879_v50  ;;  %v3966_v49 = vld [vmem:[#allocation5 + $0x520] ss:$16 sps:$4 sm:$0xff]   ;;  %v3969_v50 = vld [vmem:[#allocation5 + $0x528] ss:$16 sps:$4 sm:$0xff]  }
  0xb7   :  { %1754 = vmatprep.subr.bf16.mxu0 %v3884_v51  ;;  %1926 = vmatprep.subr.bf16.mxu1 %v3887_v52  ;;  %v3974_v51 = vld [vmem:[#allocation5 + $0x544] ss:$16 sps:$4 sm:$0xff]   ;;  %v3977_v52 = vld [vmem:[#allocation5 + $0x54c] ss:$16 sps:$4 sm:$0xff]  }
  0xba   :  { %1755 = vmatpush1.bf16.msra.mxu0 %v3882_v53  ;;  %1927 = vmatpush1.bf16.msra.mxu1 %v3885_v54  ;;  %v3972_v53 = vld [vmem:[#allocation5 + $0x540] ss:$16 sps:$4 sm:$0xff]   ;;  %v3975_v54 = vld [vmem:[#allocation5 + $0x548] ss:$16 sps:$4 sm:$0xff]  }
  0xbb   :  { %1756 = vmatprep.subr.bf16.mxu0 %v3890_v55  ;;  %1928 = vmatprep.subr.bf16.mxu1 %v3893_v56  ;;  %v3980_v55 = vld [vmem:[#allocation5 + $0x564] ss:$16 sps:$4 sm:$0xff]   ;;  %v3983_v56 = vld [vmem:[#allocation5 + $0x56c] ss:$16 sps:$4 sm:$0xff]  }
  0xbe   :  { %1757 = vmatpush1.bf16.msra.mxu0 %v3888_v57  ;;  %1929 = vmatpush1.bf16.msra.mxu1 %v3891_v58  ;;  %v3978_v57 = vld [vmem:[#allocation5 + $0x560] ss:$16 sps:$4 sm:$0xff]   ;;  %v3981_v58 = vld [vmem:[#allocation5 + $0x568] ss:$16 sps:$4 sm:$0xff]  }
  0xbf   :  { %1758 = vmatprep.subr.bf16.mxu0 %v3896_v59  ;;  %1930 = vmatprep.subr.bf16.mxu1 %v3899_v60  ;;  %v3986_v59 = vld [vmem:[#allocation5 + $0x584] ss:$16 sps:$4 sm:$0xff]   ;;  %v3989_v60 = vld [vmem:[#allocation5 + $0x58c] ss:$16 sps:$4 sm:$0xff]  }
  0xc2   :  { %1759 = vmatpush1.bf16.msra.mxu0 %v3894_v61  ;;  %1931 = vmatpush1.bf16.msra.mxu1 %v3897_v62  ;;  %v3984_v61 = vld [vmem:[#allocation5 + $0x580] ss:$16 sps:$4 sm:$0xff]   ;;  %v3987_v62 = vld [vmem:[#allocation5 + $0x588] ss:$16 sps:$4 sm:$0xff]  }
  0xc3   :  { %1760 = vmatprep.subr.bf16.mxu0 %v3902_v63  ;;  %1932 = vmatprep.subr.bf16.mxu1 %v3905_v0  ;;  %v3992_v63 = vld [vmem:[#allocation5 + $0x5a4] ss:$16 sps:$4 sm:$0xff]   ;;  %v3995_v0 = vld [vmem:[#allocation5 + $0x5ac] ss:$16 sps:$4 sm:$0xff]  }
  0xc6   :  { %1761 = vmatpush1.bf16.msra.mxu0 %v3900_v1  ;;  %1933 = vmatpush1.bf16.msra.mxu1 %v3903_v2  ;;  %v3990_v1 = vld [vmem:[#allocation5 + $0x5a0] ss:$16 sps:$4 sm:$0xff]   ;;  %v3993_v2 = vld [vmem:[#allocation5 + $0x5a8] ss:$16 sps:$4 sm:$0xff]  }
  0xc7   :  { %1762 = vmatprep.subr.bf16.mxu0 %v3908_v3  ;;  %1934 = vmatprep.subr.bf16.mxu1 %v3911_v4  ;;  %v3998_v3 = vld [vmem:[#allocation5 + $0x5c4] ss:$16 sps:$4 sm:$0xff]   ;;  %v4001_v4 = vld [vmem:[#allocation5 + $0x5cc] ss:$16 sps:$4 sm:$0xff]  }
  0xca   :  { %1763 = vmatpush1.bf16.msra.mxu0 %v3906_v5  ;;  %1935 = vmatpush1.bf16.msra.mxu1 %v3909_v6  ;;  %v3996_v5 = vld [vmem:[#allocation5 + $0x5c0] ss:$16 sps:$4 sm:$0xff]   ;;  %v3999_v6 = vld [vmem:[#allocation5 + $0x5c8] ss:$16 sps:$4 sm:$0xff]  }
  0xcb   :  { %1775 = vmatprep.subr.bf16.mxu0 %v3914_v7  ;;  %1947 = vmatprep.subr.bf16.mxu1 %v3917_v8  ;;  %v4004_v7 = vld [vmem:[#allocation5 + $0x5e4] ss:$16 sps:$4 sm:$0xff]   ;;  %v4007_v8 = vld [vmem:[#allocation5 + $0x5ec] ss:$16 sps:$4 sm:$0xff]  }
  0xcd   :  { %1765 = vmatmul.mubr.bf16.vlgmr.msra.gmra.mrb[0].mxu0 %v3185_v9  ;;  %1937 = vmatmul.mubr.bf16.vlgmr.msra.gmra.mrb[0].mxu1 %v3185_v9  ;;  %v4002_v9 = vld [vmem:[#allocation5 + $0x5e0] ss:$16 sps:$4 sm:$0xff]  }
  0xce   :  { %1776 = vmatpush1.bf16.msra.mxu0 %v3912_v10  ;;  %1948 = vmatpush1.bf16.msra.mxu1 %v3915_v11  ;;  %v4005_v10 = vld [vmem:[#allocation5 + $0x5e8] ss:$16 sps:$4 sm:$0xff]   ;;  %v4010_v11 = vld [vmem:[#allocation5 + $0x604] ss:$16 sps:$4 sm:$0xff]  }
  0xcf   :  { %1777 = vmatprep.subr.bf16.mxu0 %v3920_v12  ;;  %1949 = vmatprep.subr.bf16.mxu1 %v3923_v13  ;;  %v4013_v12 = vld [vmem:[#allocation5 + $0x60c] ss:$16 sps:$4 sm:$0xff]   ;;  %v4008_v13 = vld [vmem:[#allocation5 + $0x600] ss:$16 sps:$4 sm:$0xff]  }
  0xd0   :  { %1807 = vmatprep.mubr.bf16.mxu0 %v3188_v16  ;;  %1979 = vmatprep.mubr.bf16.mxu1 %v3188_v16  ;;  %v4011_v16 = vld [vmem:[#allocation5 + $0x608] ss:$16 sps:$4 sm:$0xff]  }
  0xd2   :  { %1778 = vmatpush1.bf16.msra.mxu0 %v3918_v17  ;;  %1950 = vmatpush1.bf16.msra.mxu1 %v3921_v18  ;;  %v3187_v17 = vcombine.low %v4491_v14, %v4493_v15  ;;  %v4499_v18 = vld [vmem:[#allocation2 + $0x18] sm:$0xff]  ;;  %v4022_v14 = vld [vmem:[#allocation5 + $0x644] ss:$16 sps:$4 sm:$0xff]  }
  0xd3   :  { %1779 = vmatprep.subr.bf16.mxu0 %v3926_v19  ;;  %1951 = vmatprep.subr.bf16.mxu1 %v3929_v20  ;;  %v4501_v19 = vld [vmem:[#allocation2 + $0x38] sm:$0xff]  ;;  %v4016_v20 = vld [vmem:[#allocation5 + $0x624] ss:$16 sps:$4 sm:$0xff]  }
  0xd4   :  { %v4025_v15 = vld [vmem:[#allocation5 + $0x64c] ss:$16 sps:$4 sm:$0xff]  }
  0xd6   :  { %1780 = vmatpush1.bf16.msra.mxu0 %v3924_v21  ;;  %1952 = vmatpush1.bf16.msra.mxu1 %v3927_v22  ;;  %v4019_v21 = vld [vmem:[#allocation5 + $0x62c] ss:$16 sps:$4 sm:$0xff]   ;;  %v4014_v22 = vld [vmem:[#allocation5 + $0x620] ss:$16 sps:$4 sm:$0xff]  }
  0xd7   :  { %1781 = vmatprep.subr.bf16.mxu0 %v3932_v23  ;;  %1953 = vmatprep.subr.bf16.mxu1 %v3935_v24  ;;  %v3190_v23 = vcombine.high %v4499_v18, %v4501_v19  ;;  %v4017_v24 = vld [vmem:[#allocation5 + $0x628] ss:$16 sps:$4 sm:$0xff]  }
  0xda   :  { %1782 = vmatpush1.bf16.msra.mxu0 %v3930_v25  ;;  %1954 = vmatpush1.bf16.msra.mxu1 %v3933_v26  ;;  %v4020_v25 = vld [vmem:[#allocation5 + $0x640] ss:$16 sps:$4 sm:$0xff]   ;;  %v4023_v26 = vld [vmem:[#allocation5 + $0x648] ss:$16 sps:$4 sm:$0xff]  }
  0xdb   :  { %1783 = vmatprep.subr.bf16.mxu0 %v3938_v27  ;;  %1955 = vmatprep.subr.bf16.mxu1 %v3941_v28  ;;  %v4028_v27 = vld [vmem:[#allocation5 + $0x664] ss:$16 sps:$4 sm:$0xff]   ;;  %v4031_v28 = vld [vmem:[#allocation5 + $0x66c] ss:$16 sps:$4 sm:$0xff]  }
  0xde   :  { %1784 = vmatpush1.bf16.msra.mxu0 %v3936_v29  ;;  %1956 = vmatpush1.bf16.msra.mxu1 %v3939_v30  ;;  %v4026_v29 = vld [vmem:[#allocation5 + $0x660] ss:$16 sps:$4 sm:$0xff]   ;;  %v4029_v30 = vld [vmem:[#allocation5 + $0x668] ss:$16 sps:$4 sm:$0xff]  }
  0xdf   :  { %1785 = vmatprep.subr.bf16.mxu0 %v3944_v31  ;;  %1957 = vmatprep.subr.bf16.mxu1 %v3947_v32  ;;  %v4034_v31 = vld [vmem:[#allocation5 + $0x684] ss:$16 sps:$4 sm:$0xff]   ;;  %v4037_v32 = vld [vmem:[#allocation5 + $0x68c] ss:$16 sps:$4 sm:$0xff]  }
  0xe2   :  { %1786 = vmatpush1.bf16.msra.mxu0 %v3942_v33  ;;  %1958 = vmatpush1.bf16.msra.mxu1 %v3945_v34  ;;  %v4032_v33 = vld [vmem:[#allocation5 + $0x680] ss:$16 sps:$4 sm:$0xff]   ;;  %v4035_v34 = vld [vmem:[#allocation5 + $0x688] ss:$16 sps:$4 sm:$0xff]  }
  0xe3   :  { %1787 = vmatprep.subr.bf16.mxu0 %v3950_v35  ;;  %1959 = vmatprep.subr.bf16.mxu1 %v3953_v36  ;;  %v4040_v35 = vld [vmem:[#allocation5 + $0x6a4] ss:$16 sps:$4 sm:$0xff]   ;;  %v4043_v36 = vld [vmem:[#allocation5 + $0x6ac] ss:$16 sps:$4 sm:$0xff]  }
  0xe6   :  { %1788 = vmatpush1.bf16.msra.mxu0 %v3948_v37  ;;  %1960 = vmatpush1.bf16.msra.mxu1 %v3951_v38  ;;  %v4038_v37 = vld [vmem:[#allocation5 + $0x6a0] ss:$16 sps:$4 sm:$0xff]   ;;  %v4041_v38 = vld [vmem:[#allocation5 + $0x6a8] ss:$16 sps:$4 sm:$0xff]  }
  0xe7   :  { %1789 = vmatprep.subr.bf16.mxu0 %v3956_v39  ;;  %1961 = vmatprep.subr.bf16.mxu1 %v3959_v40  ;;  %v4046_v39 = vld [vmem:[#allocation5 + $0x6c4] ss:$16 sps:$4 sm:$0xff]   ;;  %v4049_v40 = vld [vmem:[#allocation5 + $0x6cc] ss:$16 sps:$4 sm:$0xff]  }
  0xea   :  { %1790 = vmatpush1.bf16.msra.mxu0 %v3954_v41  ;;  %1962 = vmatpush1.bf16.msra.mxu1 %v3957_v42  ;;  %v4044_v41 = vld [vmem:[#allocation5 + $0x6c0] ss:$16 sps:$4 sm:$0xff]   ;;  %v4047_v42 = vld [vmem:[#allocation5 + $0x6c8] ss:$16 sps:$4 sm:$0xff]  }
  0xeb   :  { %1791 = vmatprep.subr.bf16.mxu0 %v3962_v43  ;;  %1963 = vmatprep.subr.bf16.mxu1 %v3965_v44  ;;  %v4052_v43 = vld [vmem:[#allocation5 + $0x6e4] ss:$16 sps:$4 sm:$0xff]   ;;  %v4055_v44 = vld [vmem:[#allocation5 + $0x6ec] ss:$16 sps:$4 sm:$0xff]  }
  0xee   :  { %1792 = vmatpush1.bf16.msra.mxu0 %v3960_v45  ;;  %1964 = vmatpush1.bf16.msra.mxu1 %v3963_v46  ;;  %v4050_v45 = vld [vmem:[#allocation5 + $0x6e0] ss:$16 sps:$4 sm:$0xff]   ;;  %v4053_v46 = vld [vmem:[#allocation5 + $0x6e8] ss:$16 sps:$4 sm:$0xff]  }
  0xef   :  { %1793 = vmatprep.subr.bf16.mxu0 %v3968_v47  ;;  %1965 = vmatprep.subr.bf16.mxu1 %v3971_v48  ;;  %v4058_v47 = vld [vmem:[#allocation5 + $0x704] ss:$16 sps:$4 sm:$0xff]   ;;  %v4061_v48 = vld [vmem:[#allocation5 + $0x70c] ss:$16 sps:$4 sm:$0xff]  }
  0xf2   :  { %1794 = vmatpush1.bf16.msra.mxu0 %v3966_v49  ;;  %1966 = vmatpush1.bf16.msra.mxu1 %v3969_v50  ;;  %v4056_v49 = vld [vmem:[#allocation5 + $0x700] ss:$16 sps:$4 sm:$0xff]   ;;  %v4059_v50 = vld [vmem:[#allocation5 + $0x708] ss:$16 sps:$4 sm:$0xff]  }
  0xf3   :  { %1795 = vmatprep.subr.bf16.mxu0 %v3974_v51  ;;  %1967 = vmatprep.subr.bf16.mxu1 %v3977_v52  ;;  %v4064_v51 = vld [vmem:[#allocation5 + $0x724] ss:$16 sps:$4 sm:$0xff]   ;;  %v4067_v52 = vld [vmem:[#allocation5 + $0x72c] ss:$16 sps:$4 sm:$0xff]  }
  0xf6   :  { %1796 = vmatpush1.bf16.msra.mxu0 %v3972_v53  ;;  %1968 = vmatpush1.bf16.msra.mxu1 %v3975_v54  ;;  %v4062_v53 = vld [vmem:[#allocation5 + $0x720] ss:$16 sps:$4 sm:$0xff]   ;;  %v4065_v54 = vld [vmem:[#allocation5 + $0x728] ss:$16 sps:$4 sm:$0xff]  }
  0xf7   :  { %1797 = vmatprep.subr.bf16.mxu0 %v3980_v55  ;;  %1969 = vmatprep.subr.bf16.mxu1 %v3983_v56  ;;  %v4070_v55 = vld [vmem:[#allocation5 + $0x744] ss:$16 sps:$4 sm:$0xff]   ;;  %v4073_v56 = vld [vmem:[#allocation5 + $0x74c] ss:$16 sps:$4 sm:$0xff]  }
  0xfa   :  { %1798 = vmatpush1.bf16.msra.mxu0 %v3978_v57  ;;  %1970 = vmatpush1.bf16.msra.mxu1 %v3981_v58  ;;  %v4068_v57 = vld [vmem:[#allocation5 + $0x740] ss:$16 sps:$4 sm:$0xff]   ;;  %v4071_v58 = vld [vmem:[#allocation5 + $0x748] ss:$16 sps:$4 sm:$0xff]  }
  0xfb   :  { %1799 = vmatprep.subr.bf16.mxu0 %v3986_v59  ;;  %1971 = vmatprep.subr.bf16.mxu1 %v3989_v60  ;;  %v4076_v59 = vld [vmem:[#allocation5 + $0x764] ss:$16 sps:$4 sm:$0xff]   ;;  %v4079_v60 = vld [vmem:[#allocation5 + $0x76c] ss:$16 sps:$4 sm:$0xff]  }
  0xfe   :  { %1800 = vmatpush1.bf16.msra.mxu0 %v3984_v61  ;;  %1972 = vmatpush1.bf16.msra.mxu1 %v3987_v62  ;;  %v4074_v61 = vld [vmem:[#allocation5 + $0x760] ss:$16 sps:$4 sm:$0xff]   ;;  %v4077_v62 = vld [vmem:[#allocation5 + $0x768] ss:$16 sps:$4 sm:$0xff]  }
  0xff   :  { %1801 = vmatprep.subr.bf16.mxu0 %v3992_v63  ;;  %1973 = vmatprep.subr.bf16.mxu1 %v3995_v0  ;;  %v4082_v63 = vld [vmem:[#allocation5 + $0x784] ss:$16 sps:$4 sm:$0xff]   ;;  %v4085_v0 = vld [vmem:[#allocation5 + $0x78c] ss:$16 sps:$4 sm:$0xff]  }
 0x102   :  { %1802 = vmatpush1.bf16.msra.mxu0 %v3990_v1  ;;  %1974 = vmatpush1.bf16.msra.mxu1 %v3993_v2  ;;  %v4080_v1 = vld [vmem:[#allocation5 + $0x780] ss:$16 sps:$4 sm:$0xff]   ;;  %v4083_v2 = vld [vmem:[#allocation5 + $0x788] ss:$16 sps:$4 sm:$0xff]  }
 0x103   :  { %1803 = vmatprep.subr.bf16.mxu0 %v3998_v3  ;;  %1975 = vmatprep.subr.bf16.mxu1 %v4001_v4  ;;  %v4088_v3 = vld [vmem:[#allocation5 + $0x7a4] ss:$16 sps:$4 sm:$0xff]   ;;  %v4091_v4 = vld [vmem:[#allocation5 + $0x7ac] ss:$16 sps:$4 sm:$0xff]  }
 0x106   :  { %1804 = vmatpush1.bf16.msra.mxu0 %v3996_v5  ;;  %1976 = vmatpush1.bf16.msra.mxu1 %v3999_v6  ;;  %v4086_v5 = vld [vmem:[#allocation5 + $0x7a0] ss:$16 sps:$4 sm:$0xff]   ;;  %v4089_v6 = vld [vmem:[#allocation5 + $0x7a8] ss:$16 sps:$4 sm:$0xff]  }
 0x107   :  { %1805 = vmatprep.subr.bf16.mxu0 %v4004_v7  ;;  %1977 = vmatprep.subr.bf16.mxu1 %v4007_v8  ;;  %v4094_v7 = vld [vmem:[#allocation5 + $0x7c4] ss:$16 sps:$4 sm:$0xff]   ;;  %v4097_v8 = vld [vmem:[#allocation5 + $0x7cc] ss:$16 sps:$4 sm:$0xff]  }
 0x10a   :  { %1806 = vmatpush1.bf16.msra.mxu0 %v4002_v9  ;;  %1978 = vmatpush1.bf16.msra.mxu1 %v4005_v10  ;;  %v4092_v9 = vld [vmem:[#allocation5 + $0x7c0] ss:$16 sps:$4 sm:$0xff]   ;;  %v4095_v10 = vld [vmem:[#allocation5 + $0x7c8] ss:$16 sps:$4 sm:$0xff]  }
 0x10b   :  { %1818 = vmatprep.subr.bf16.mxu0 %v4010_v11  ;;  %1990 = vmatprep.subr.bf16.mxu1 %v4013_v12  ;;  %v4100_v11 = vld [vmem:[#allocation5 + $0x7e4] ss:$16 sps:$4 sm:$0xff]   ;;  %v4103_v12 = vld [vmem:[#allocation5 + $0x7ec] ss:$16 sps:$4 sm:$0xff]  }
 0x10d   :  { %1808 = vmatmul.mubr.bf16.vlgmr.msra.gmra.mrb[0].mxu0 %v3187_v17  ;;  %1980 = vmatmul.mubr.bf16.vlgmr.msra.gmra.mrb[0].mxu1 %v3187_v17  ;;  %v4106_v17 = vld [vmem:[#allocation7 + $0x4] ss:$12 sps:$4 sm:$0xff]  }
 0x10e   :  { %1819 = vmatpush1.bf16.msra.mxu0 %v4008_v13  ;;  %1991 = vmatpush1.bf16.msra.mxu1 %v4011_v16  ;;  %v4098_v13 = vld [vmem:[#allocation5 + $0x7e0] ss:$16 sps:$4 sm:$0xff]   ;;  %v4101_v16 = vld [vmem:[#allocation5 + $0x7e8] ss:$16 sps:$4 sm:$0xff]  }
 0x10f   :  { %1820 = vmatprep.subr.bf16.mxu0 %v4016_v20  ;;  %1992 = vmatprep.subr.bf16.mxu1 %v4019_v21  ;;  %v4131_v20 = vld [vmem:[#allocation7 + $0xc8] ss:$12 sps:$4 sm:$0xff]   ;;  %v3189_v21 = vcombine.low %v4499_v18, %v4501_v19  ;;  %v4110_v18 = vld [vmem:[#allocation7 + $0x30] ss:$12 sps:$4 sm:$0xff]   ;;  %v4142_v19 = vld [vmem:[#allocation7 + $0x38] ss:$12 sps:$4 sm:$0xff]  }
 0x110   :  { %1850 = vmatprep.mubr.bf16.mxu0 %v3190_v23  ;;  %2022 = vmatprep.mubr.bf16.mxu1 %v3190_v23  ;;  %v4132_v23 = vld [vmem:[#allocation7 + $0x8] ss:$12 sps:$4 sm:$0xff]  }
 0x112   :  { %1821 = vmatpush1.bf16.msra.mxu0 %v4014_v22  ;;  %1993 = vmatpush1.bf16.msra.mxu1 %v4017_v24  ;;  %v4104_v22 = vld [vmem:[#allocation7] ss:$12 sps:$4 sm:$0xff]   ;;  %v4109_v24 = vld [vmem:[#allocation7 + $0x1c] ss:$12 sps:$4 sm:$0xff]  }
 0x113   :  { %1822 = vmatprep.subr.bf16.mxu0 %v4022_v14  ;;  %1994 = vmatprep.subr.bf16.mxu1 %v4025_v15  ;;  %v4136_v14 = vld [vmem:[#allocation7 + $0xe0] ss:$12 sps:$4 sm:$0xff]   ;;  %v4107_v15 = vld [vmem:[#allocation7 + $0x18] ss:$12 sps:$4 sm:$0xff]  }
 0x116   :  { %1823 = vmatpush1.bf16.msra.mxu0 %v4020_v25  ;;  %1995 = vmatpush1.bf16.msra.mxu1 %v4023_v26  ;;  %v4137_v25 = vld [vmem:[#allocation7 + $0x20] ss:$12 sps:$4 sm:$0xff]  }
 0x117   :  { %1824 = vmatprep.subr.bf16.mxu0 %v4028_v27  ;;  %1996 = vmatprep.subr.bf16.mxu1 %v4031_v28  ;;  %v4112_v26 = vld [vmem:[#allocation7 + $0x34] ss:$12 sps:$4 sm:$0xff]   ;;  %v4141_v27 = vld [vmem:[#allocation7 + $0xf8] ss:$12 sps:$4 sm:$0xff]  }
 0x118   :  { %v4115_v28 = vld [vmem:[#allocation7 + $0x4c] ss:$12 sps:$4 sm:$0xff]  }
 0x11a   :  { %1825 = vmatpush1.bf16.msra.mxu0 %v4026_v29  ;;  %1997 = vmatpush1.bf16.msra.mxu1 %v4029_v30  ;;  %v4146_v29 = vld [vmem:[#allocation7 + $0x110] ss:$12 sps:$4 sm:$0xff]   ;;  %v4113_v30 = vld [vmem:[#allocation7 + $0x48] ss:$12 sps:$4 sm:$0xff]  }
 0x11b   :  { %1826 = vmatprep.subr.bf16.mxu0 %v4034_v31  ;;  %1998 = vmatprep.subr.bf16.mxu1 %v4037_v32  ;;  %v4147_v31 = vld [vmem:[#allocation7 + $0x50] ss:$12 sps:$4 sm:$0xff]  }
 0x11c   :  { %v4118_v32 = vld [vmem:[#allocation7 + $0x64] ss:$12 sps:$4 sm:$0xff]  }
 0x11e   :  { %1827 = vmatpush1.bf16.msra.mxu0 %v4032_v33  ;;  %1999 = vmatpush1.bf16.msra.mxu1 %v4035_v34  ;;  %v4151_v33 = vld [vmem:[#allocation7 + $0x128] ss:$12 sps:$4 sm:$0xff]   ;;  %v4116_v34 = vld [vmem:[#allocation7 + $0x60] ss:$12 sps:$4 sm:$0xff]  }
 0x11f   :  { %1828 = vmatprep.subr.bf16.mxu0 %v4040_v35  ;;  %2000 = vmatprep.subr.bf16.mxu1 %v4043_v36  ;;  %v4152_v35 = vld [vmem:[#allocation7 + $0x68] ss:$12 sps:$4 sm:$0xff]  }
 0x120   :  { %v4121_v36 = vld [vmem:[#allocation7 + $0x7c] ss:$12 sps:$4 sm:$0xff]  }
 0x122   :  { %1829 = vmatpush1.bf16.msra.mxu0 %v4038_v37  ;;  %2001 = vmatpush1.bf16.msra.mxu1 %v4041_v38  ;;  %v4156_v37 = vld [vmem:[#allocation7 + $0x140] ss:$12 sps:$4 sm:$0xff]   ;;  %v4119_v38 = vld [vmem:[#allocation7 + $0x78] ss:$12 sps:$4 sm:$0xff]  }
 0x123   :  { %1830 = vmatprep.subr.bf16.mxu0 %v4046_v39  ;;  %2002 = vmatprep.subr.bf16.mxu1 %v4049_v40  ;;  %v4157_v39 = vld [vmem:[#allocation7 + $0x80] ss:$12 sps:$4 sm:$0xff]  }
 0x124   :  { %v4124_v40 = vld [vmem:[#allocation7 + $0x94] ss:$12 sps:$4 sm:$0xff]  }
 0x126   :  { %1831 = vmatpush1.bf16.msra.mxu0 %v4044_v41  ;;  %2003 = vmatpush1.bf16.msra.mxu1 %v4047_v42  ;;  %v4122_v41 = vld [vmem:[#allocation7 + $0x90] ss:$12 sps:$4 sm:$0xff]   ;;  %v4127_v42 = vld [vmem:[#allocation7 + $0xac] ss:$12 sps:$4 sm:$0xff]  }
 0x127   :  { %1832 = vmatprep.subr.bf16.mxu0 %v4052_v43  ;;  %2004 = vmatprep.subr.bf16.mxu1 %v4055_v44  ;;  %v4125_v43 = vld [vmem:[#allocation7 + $0xa8] ss:$12 sps:$4 sm:$0xff]   ;;  %v4130_v44 = vld [vmem:[#allocation7 + $0xc4] ss:$12 sps:$4 sm:$0xff]  }
 0x12a   :  { %1833 = vmatpush1.bf16.msra.mxu0 %v4050_v45  ;;  %2005 = vmatpush1.bf16.msra.mxu1 %v4053_v46  ;;  %v4128_v45 = vld [vmem:[#allocation7 + $0xc0] ss:$12 sps:$4 sm:$0xff]   ;;  %v4135_v46 = vld [vmem:[#allocation7 + $0xdc] ss:$12 sps:$4 sm:$0xff]  }
 0x12b   :  { %1834 = vmatprep.subr.bf16.mxu0 %v4058_v47  ;;  %2006 = vmatprep.subr.bf16.mxu1 %v4061_v48  ;;  %v4133_v47 = vld [vmem:[#allocation7 + $0xd8] ss:$12 sps:$4 sm:$0xff]   ;;  %v4140_v48 = vld [vmem:[#allocation7 + $0xf4] ss:$12 sps:$4 sm:$0xff]  }
 0x12e   :  { %1835 = vmatpush1.bf16.msra.mxu0 %v4056_v49  ;;  %2007 = vmatpush1.bf16.msra.mxu1 %v4059_v50  ;;  %v4138_v49 = vld [vmem:[#allocation7 + $0xf0] ss:$12 sps:$4 sm:$0xff]   ;;  %v4145_v50 = vld [vmem:[#allocation7 + $0x10c] ss:$12 sps:$4 sm:$0xff]  }
 0x12f   :  { %1836 = vmatprep.subr.bf16.mxu0 %v4064_v51  ;;  %2008 = vmatprep.subr.bf16.mxu1 %v4067_v52  ;;  %v4143_v51 = vld [vmem:[#allocation7 + $0x108] ss:$12 sps:$4 sm:$0xff]   ;;  %v4150_v52 = vld [vmem:[#allocation7 + $0x124] ss:$12 sps:$4 sm:$0xff]  }
 0x132   :  { %1837 = vmatpush1.bf16.msra.mxu0 %v4062_v53  ;;  %2009 = vmatpush1.bf16.msra.mxu1 %v4065_v54  ;;  %v4148_v53 = vld [vmem:[#allocation7 + $0x120] ss:$12 sps:$4 sm:$0xff]   ;;  %v4155_v54 = vld [vmem:[#allocation7 + $0x13c] ss:$12 sps:$4 sm:$0xff]  }
 0x133   :  { %1838 = vmatprep.subr.bf16.mxu0 %v4070_v55  ;;  %2010 = vmatprep.subr.bf16.mxu1 %v4073_v56  ;;  %v4153_v55 = vld [vmem:[#allocation7 + $0x138] ss:$12 sps:$4 sm:$0xff]   ;;  %v4160_v56 = vld [vmem:[#allocation7 + $0x154] ss:$12 sps:$4 sm:$0xff]  }
 0x136   :  { %1839 = vmatpush1.bf16.msra.mxu0 %v4068_v57  ;;  %2011 = vmatpush1.bf16.msra.mxu1 %v4071_v58  ;;  %v4161_v57 = vld [vmem:[#allocation7 + $0x158] ss:$12 sps:$4 sm:$0xff]   ;;  %v4158_v58 = vld [vmem:[#allocation7 + $0x150] ss:$12 sps:$4 sm:$0xff]  }
 0x137   :  { %1840 = vmatprep.subr.bf16.mxu0 %v4076_v59  ;;  %2012 = vmatprep.subr.bf16.mxu1 %v4079_v60  ;;  %v4162_v59 = vld [vmem:[#allocation7 + $0x98] ss:$12 sps:$4 sm:$0xff]  }
 0x138   :  { %v4165_v60 = vld [vmem:[#allocation7 + $0x16c] ss:$12 sps:$4 sm:$0xff]  }
 0x13a   :  { %1841 = vmatpush1.bf16.msra.mxu0 %v4074_v61  ;;  %2013 = vmatpush1.bf16.msra.mxu1 %v4077_v62  ;;  %v4166_v61 = vld [vmem:[#allocation7 + $0x170] ss:$12 sps:$4 sm:$0xff]   ;;  %v4163_v62 = vld [vmem:[#allocation7 + $0x168] ss:$12 sps:$4 sm:$0xff]  }
 0x13b   :  { %1842 = vmatprep.subr.bf16.mxu0 %v4082_v63  ;;  %2014 = vmatprep.subr.bf16.mxu1 %v4085_v0  ;;  %v4167_v63 = vld [vmem:[#allocation7 + $0xb0] ss:$12 sps:$4 sm:$0xff]  }
 0x13c   :  { %v4170_v0 = vld [vmem:[#allocation7 + $0x184] ss:$12 sps:$4 sm:$0xff]  }
 0x13e   :  { %1843 = vmatpush1.bf16.msra.mxu0 %v4080_v1  ;;  %2015 = vmatpush1.bf16.msra.mxu1 %v4083_v2  ;;  %v4171_v1 = vld [vmem:[#allocation7 + $0x248] ss:$12 sps:$4 sm:$0xff]   ;;  %v349_v2 = vlaneseq }
 0x13f   :  { %1844 = vmatprep.subr.bf16.mxu0 %v4088_v3  ;;  %2016 = vmatprep.subr.bf16.mxu1 %v4091_v4 }
 0x140   :  { %v4507_v3 = vshrl.u32 %v349_v2, 7  ;;  %v4202_v2 = vld [vmem:[#allocation7 + $0x218] ss:$12 sps:$4 sm:$0xff]  }
 0x142   :  { %1845 = vmatpush1.bf16.msra.mxu0 %v4086_v5  ;;  %2017 = vmatpush1.bf16.msra.mxu1 %v4089_v6  ;;  %v351_v4 = vsub.s32 0, %v4507_v3  ;;  %v359_v5 = vsub.s32 2, %v4507_v3  ;;  %v347_v6 = vld [vmem:[%s4561_s2] sm:$0xf] }
 0x143   :  { %1846 = vmatprep.subr.bf16.mxu0 %v4094_v7  ;;  %2018 = vmatprep.subr.bf16.mxu1 %v4097_v8  ;;  %v355_v7 = vsub.s32 1, %v4507_v3  ;;  %v363_v8 = vsub.s32 3, %v4507_v3  ;;  %v4249_v3 = vld [vmem:[#allocation8 + $0x88] sm:$0xff]  }
 0x146   :  { %1847 = vmatpush1.bf16.msra.mxu0 %v4092_v9  ;;  %2019 = vmatpush1.bf16.msra.mxu1 %v4095_v10  ;;  %v352_v9 = vrot.slane %v347_v6, %v351_v4  ;;  %v360_v10 = vrot.slane %v347_v6, %v359_v5 }
 0x147   :  { %1848 = vmatprep.subr.bf16.mxu0 %v4100_v11  ;;  %2020 = vmatprep.subr.bf16.mxu1 %v4103_v12  ;;  %v356_v11 = vrot.slane %v347_v6, %v355_v7  ;;  %v364_v12 = vrot.slane %v347_v6, %v363_v8  ;;  %v4205_v6 = vld [vmem:[#allocation7 + $0x22c] ss:$12 sps:$4 sm:$0xff]   ;;  %v4206_v8 = vld [vmem:[#allocation7 + $0x2f0] ss:$12 sps:$4 sm:$0xff]  }
 0x14a   :  { %1849 = vmatpush1.bf16.msra.mxu0 %v4098_v13  ;;  %2021 = vmatpush1.bf16.msra.mxu1 %v4101_v16 }
 0x14b   :  { %2702 = vmatprep.subr.bf16.mxu0 %v4106_v17  ;;  %3568 = vmatprep.subr.bf16.mxu1 %v4131_v20 }
 0x14d   :  { %1851 = vmatmul.mubr.bf16.vlgmr.msra.gmra.mrb[0].mxu0 %v3189_v21  ;;  %2023 = vmatmul.mubr.bf16.vlgmr.msra.gmra.mrb[0].mxu1 %v3189_v21 }
 0x14e   :  { %2703 = vmatpush1.bf16.msra.mxu0 %v4104_v22  ;;  %3569 = vmatpush3.bf16.msra.mxu1 %v4132_v23 }
 0x14f   :  { %2704 = vmatprep.subr.bf16.mxu0 %v4109_v24  ;;  %3570 = vmatprep.subr.bf16.mxu1 %v4136_v14 }
 0x152   :  { %2705 = vmatpush1.bf16.msra.mxu0 %v4107_v15  ;;  %3571 = vmatpush3.bf16.msra.mxu1 %v4137_v25 }
 0x153   :  { %2706 = vmatprep.subr.bf16.mxu0 %v4112_v26  ;;  %3572 = vmatprep.subr.bf16.mxu1 %v4141_v27 }
 0x156   :  { %2707 = vmatpush1.bf16.msra.mxu0 %v4110_v18  ;;  %3573 = vmatpush3.bf16.msra.mxu1 %v4142_v19 }
 0x157   :  { %2708 = vmatprep.subr.bf16.mxu0 %v4115_v28  ;;  %3574 = vmatprep.subr.bf16.mxu1 %v4146_v29 }
 0x15a   :  { %2709 = vmatpush1.bf16.msra.mxu0 %v4113_v30  ;;  %3575 = vmatpush3.bf16.msra.mxu1 %v4147_v31 }
 0x15b   :  { %2710 = vmatprep.subr.bf16.mxu0 %v4118_v32  ;;  %3576 = vmatprep.subr.bf16.mxu1 %v4151_v33 }
 0x15e   :  { %2711 = vmatpush1.bf16.msra.mxu0 %v4116_v34  ;;  %3577 = vmatpush3.bf16.msra.mxu1 %v4152_v35 }
 0x15f   :  { %2712 = vmatprep.subr.bf16.mxu0 %v4121_v36  ;;  %3578 = vmatprep.subr.bf16.mxu1 %v4156_v37 }
 0x162   :  { %2713 = vmatpush1.bf16.msra.mxu0 %v4119_v38  ;;  %3579 = vmatpush3.bf16.msra.mxu1 %v4157_v39 }
 0x163   :  { %2714 = vmatprep.subr.bf16.mxu0 %v4124_v40  ;;  %3580 = vmatprep.subr.bf16.mxu1 %v4161_v57  ;;  %v4188_v57 = vld [vmem:[#allocation7 + $0x1e0] ss:$12 sps:$4 sm:$0xff]  }
 0x166   :  { %2715 = vmatpush1.bf16.msra.mxu0 %v4122_v41  ;;  %3581 = vmatpush3.bf16.msra.mxu1 %v4162_v59  ;;  %v4168_v41 = vld [vmem:[#allocation7 + $0x180] ss:$12 sps:$4 sm:$0xff]   ;;  %v4195_v59 = vld [vmem:[#allocation7 + $0x1fc] ss:$12 sps:$4 sm:$0xff]  }
 0x167   :  { %2716 = vmatprep.subr.bf16.mxu0 %v4127_v42  ;;  %3582 = vmatprep.subr.bf16.mxu1 %v4166_v61  ;;  %v4172_v42 = vld [vmem:[#allocation7 + $0x188] ss:$12 sps:$4 sm:$0xff]   ;;  %v4193_v61 = vld [vmem:[#allocation7 + $0x1f8] ss:$12 sps:$4 sm:$0xff]  }
 0x16a   :  { %2717 = vmatpush1.bf16.msra.mxu0 %v4125_v43  ;;  %3583 = vmatpush3.bf16.msra.mxu1 %v4167_v63  ;;  %v4175_v43 = vld [vmem:[#allocation7 + $0x19c] ss:$12 sps:$4 sm:$0xff]   ;;  %v4200_v63 = vld [vmem:[#allocation7 + $0x214] ss:$12 sps:$4 sm:$0xff]  }
 0x16b   :  { %2718 = vmatprep.subr.bf16.mxu0 %v4130_v44  ;;  %3590 = vmatprep.subr.bf16.mxu1 %v4171_v1  ;;  %v4176_v44 = vld [vmem:[#allocation7 + $0x260] ss:$12 sps:$4 sm:$0xff]   ;;  %v4198_v1 = vld [vmem:[#allocation7 + $0x210] ss:$12 sps:$4 sm:$0xff]  }
 0x16e   :  { %2719 = vmatpush1.bf16.msra.mxu0 %v4128_v45  ;;  %v4173_v45 = vld [vmem:[#allocation7 + $0x198] ss:$12 sps:$4 sm:$0xff]  }
 0x16f   :  { %2720 = vmatprep.subr.bf16.mxu0 %v4135_v46  ;;  %v4177_v46 = vld [vmem:[#allocation7 + $0x1a0] ss:$12 sps:$4 sm:$0xff]  }
 0x172   :  { %2721 = vmatpush1.bf16.msra.mxu0 %v4133_v47  ;;  %v4180_v47 = vld [vmem:[#allocation7 + $0x1b4] ss:$12 sps:$4 sm:$0xff]  }
 0x173   :  { %2722 = vmatprep.subr.bf16.mxu0 %v4140_v48  ;;  %v4181_v48 = vld [vmem:[#allocation7 + $0x278] ss:$12 sps:$4 sm:$0xff]  }
 0x176   :  { %2723 = vmatpush1.bf16.msra.mxu0 %v4138_v49  ;;  %v4178_v49 = vld [vmem:[#allocation7 + $0x1b0] ss:$12 sps:$4 sm:$0xff]  }
 0x177   :  { %2724 = vmatprep.subr.bf16.mxu0 %v4145_v50  ;;  %v4182_v50 = vld [vmem:[#allocation7 + $0x1b8] ss:$12 sps:$4 sm:$0xff]  }
 0x17a   :  { %2725 = vmatpush1.bf16.msra.mxu0 %v4143_v51  ;;  %v4185_v51 = vld [vmem:[#allocation7 + $0x1cc] ss:$12 sps:$4 sm:$0xff]  }
 0x17b   :  { %2726 = vmatprep.subr.bf16.mxu0 %v4150_v52  ;;  %v4186_v52 = vld [vmem:[#allocation7 + $0x290] ss:$12 sps:$4 sm:$0xff]  }
 0x17e   :  { %2727 = vmatpush1.bf16.msra.mxu0 %v4148_v53  ;;  %v4183_v53 = vld [vmem:[#allocation7 + $0x1c8] ss:$12 sps:$4 sm:$0xff]  }
 0x17f   :  { %2728 = vmatprep.subr.bf16.mxu0 %v4155_v54  ;;  %v4187_v54 = vld [vmem:[#allocation7 + $0x1d0] ss:$12 sps:$4 sm:$0xff]  }
 0x182   :  { %2729 = vmatpush1.bf16.msra.mxu0 %v4153_v55  ;;  %v4190_v55 = vld [vmem:[#allocation7 + $0x1e4] ss:$12 sps:$4 sm:$0xff]  }
 0x183   :  { %2730 = vmatprep.subr.bf16.mxu0 %v4160_v56  ;;  %v4191_v56 = vld [vmem:[#allocation7 + $0x2a8] ss:$12 sps:$4 sm:$0xff]  }
 0x186   :  { %2731 = vmatpush1.bf16.msra.mxu0 %v4158_v58  ;;  %v4192_v58 = vld [vmem:[#allocation7 + $0x1e8] ss:$12 sps:$4 sm:$0xff]  }
 0x187   :  { %2732 = vmatprep.subr.bf16.mxu0 %v4165_v60  ;;  %v4196_v60 = vld [vmem:[#allocation7 + $0x2c0] ss:$12 sps:$4 sm:$0xff]  }
 0x18a   :  { %2733 = vmatpush1.bf16.msra.mxu0 %v4163_v62  ;;  %v4197_v62 = vld [vmem:[#allocation7 + $0x200] ss:$12 sps:$4 sm:$0xff]  }
 0x18b   :  { %2745 = vmatprep.subr.bf16.mxu0 %v4170_v0  ;;  %v4201_v0 = vld [vmem:[#allocation7 + $0x2d8] ss:$12 sps:$4 sm:$0xff]  }
 0x220   :  { %v1852_v13 = vpop.f32.mrb[0].mxu0  ;;  %v2024_v16 = vpop.f32.mrb[0].mxu1 }
 0x221   :  { %v3663_v17 = vadd.f32 %v1852_v13, %v352_v9  ;;  %v3667_v20 = vadd.f32 %v2024_v16, %v360_v10  ;;  %v1854_v21 = vpop.f32.mrb[1].mxu0  ;;  %v2026_v22 = vpop.f32.mrb[1].mxu1  ;;  %v4213_v13 = vld [vmem:[#allocation7 + $0x25c] ss:$12 sps:$4 sm:$0xff]   ;;  %v4211_v16 = vld [vmem:[#allocation7 + $0x258] ss:$12 sps:$4 sm:$0xff]  }
 0x222   :  { %v3664_v23 = vadd.f32 %v1854_v21, %v356_v11  ;;  %v3668_v24 = vadd.f32 %v2026_v22, %v364_v12  ;;  %v1856_v14 = vpop.f32.mrb[2].mxu0  ;;  %v2028_v15 = vpop.f32.mrb[2].mxu1  ;;  %v4219_v21 = vld [vmem:[#allocation7 + $0x28c] ss:$12 sps:$4 sm:$0xff]   ;;  %v4217_v22 = vld [vmem:[#allocation7 + $0x288] ss:$12 sps:$4 sm:$0xff]  }
 0x223   :  { %v3665_v25 = vadd.f32 %v1856_v14, %v352_v9  ;;  %v3669_v26 = vadd.f32 %v2028_v15, %v360_v10  ;;  %v1858_v27 = vpop.f32.mrb[3].mxu0  ;;  %v2030_v18 = vpop.f32.mrb[3].mxu1  ;;  %v2033_v29 = vmax.f32 %v3663_v17, 0.0  ;;  %v2035_v30 = vmax.f32 %v3667_v20, 0.0  ;;  %v4203_v9 = vld [vmem:[#allocation7 + $0x228] ss:$12 sps:$4 sm:$0xff]  }
 0x224   :  { %v3666_v19 = vadd.f32 %v1858_v27, %v356_v11  ;;  %v3670_v28 = vadd.f32 %v2030_v18, %v364_v12  ;;  %v2034_v33 = vmax.f32 %v3664_v23, 0.0  ;;  %v2036_v34 = vmax.f32 %v3668_v24, 0.0  ;;  %v4207_v10 = vld [vmem:[#allocation7 + $0x230] ss:$12 sps:$4 sm:$0xff]   ;;  %v4208_v12 = vld [vmem:[#allocation7 + $0x240] ss:$12 sps:$4 sm:$0xff]  }
 0x225   :  { %v2037_v31 = vmax.f32 %v3665_v25, 0.0  ;;  %v2039_v32 = vmax.f32 %v3669_v26, 0.0  ;;  %v4210_v11 = vld [vmem:[#allocation7 + $0x244] ss:$12 sps:$4 sm:$0xff]   ;;  %v4216_v17 = vld [vmem:[#allocation7 + $0x274] ss:$12 sps:$4 sm:$0xff]  }
 0x226   :  { %v2038_v35 = vmax.f32 %v3666_v19, 0.0  ;;  %v2040_v36 = vmax.f32 %v3670_v28, 0.0  ;;  %v4214_v20 = vld [vmem:[#allocation7 + $0x270] ss:$12 sps:$4 sm:$0xff]   ;;  %v4220_v24 = vld [vmem:[#allocation7 + $0x2a0] ss:$12 sps:$4 sm:$0xff]  }
 0x227   :  { %v2041_v37 = vpack.c.bf16 %v2037_v31, %v2033_v29  ;;  %v4522_v38 = vpack.c.bf16 %v2039_v32, %v2035_v30  ;;  %v4222_v23 = vld [vmem:[#allocation7 + $0x2a4] ss:$12 sps:$4 sm:$0xff]   ;;  %v4225_v14 = vld [vmem:[#allocation7 + $0x2bc] ss:$12 sps:$4 sm:$0xff]   ;;  %v4228_v25 = vld [vmem:[#allocation7 + $0x2d4] ss:$12 sps:$4 sm:$0xff]  }
 0x228   :  { %v2042_v39 = vpack.c.bf16 %v2038_v35, %v2034_v33  ;;  %v2044_v40 = vpack.c.bf16 %v2040_v36, %v2036_v34  ;;  %v4223_v15 = vld [vmem:[#allocation7 + $0x2b8] ss:$12 sps:$4 sm:$0xff]   ;;  %v4226_v26 = vld [vmem:[#allocation7 + $0x2d0] ss:$12 sps:$4 sm:$0xff]   ;;  %v4229_v18 = vld [vmem:[#allocation7 + $0x2e8] ss:$12 sps:$4 sm:$0xff]  }
 0x229   :  { %v4231_v27 = vld [vmem:[#allocation7 + $0x2ec] ss:$12 sps:$4 sm:$0xff]   ;;  %v4232_v19 = vld [vmem:[#allocation8 + $0x40] sm:$0xff]   ;;  %v4236_v31 = vld [vmem:[#allocation8 + $0x50] sm:$0xff]  }
 0x22a   :  { %2734 = vmatprep.mubr.bf16.mxu0 %v2042_v39  ;;  %2820 = vmatprep.mubr.bf16.mxu1 %v2042_v39  ;;  %v4233_v28 = vld [vmem:[#allocation8] sm:$0xff]   ;;  %v4234_v29 = vld [vmem:[#allocation8 + $0x48] sm:$0xff]   ;;  %v4237_v32 = vld [vmem:[#allocation8 + $0x10] sm:$0xff]  }
 0x22b   :  { %2735 = vmatmul.mubr.bf16.vlgmr.msra.gmra.mrb[4].mxu0 %v2041_v37  ;;  %2821 = vmatmul.mubr.bf16.vlgmr.msra.gmra.mrb[4].mxu1 %v2041_v37  ;;  %v4235_v30 = vld [vmem:[#allocation8 + $0x8] sm:$0xff]   ;;  %v4238_v33 = vld [vmem:[#allocation8 + $0x58] sm:$0xff]   ;;  %v4240_v35 = vld [vmem:[#allocation8 + $0x60] sm:$0xff]  }
 0x22c   :  { %2746 = vmatpush1.bf16.msra.mxu0 %v4168_v41  ;;  %3591 = vmatpush3.bf16.msra.mxu1 %v4172_v42  ;;  %v4239_v34 = vld [vmem:[#allocation8 + $0x18] sm:$0xff]   ;;  %v4241_v36 = vld [vmem:[#allocation8 + $0x20] sm:$0xff]   ;;  %v4242_v37 = vld [vmem:[#allocation8 + $0x68] sm:$0xff]  }
 0x22d   :  { %2777 = vmatprep.mubr.bf16.mxu0 %v2044_v40  ;;  %2861 = vmatprep.mubr.bf16.mxu1 %v2044_v40  ;;  %v4244_v39 = vld [vmem:[#allocation8 + $0x70] sm:$0xff]   ;;  %v4246_v41 = vld [vmem:[#allocation8 + $0x78] sm:$0xff]  }
 0x22e   :  { %2747 = vmatprep.subr.bf16.mxu0 %v4175_v43  ;;  %3592 = vmatprep.subr.bf16.mxu1 %v4176_v44  ;;  %v4245_v40 = vld [vmem:[#allocation8 + $0x30] sm:$0xff]   ;;  %v4247_v42 = vld [vmem:[#allocation8 + $0x38] sm:$0xff]   ;;  %v4390_v43 = vmov 0.0  }
 0x230   :  { %2748 = vmatpush1.bf16.msra.mxu0 %v4173_v45  ;;  %3593 = vmatpush3.bf16.msra.mxu1 %v4177_v46 }
 0x231   :  { %2749 = vmatprep.subr.bf16.mxu0 %v4180_v47  ;;  %3594 = vmatprep.subr.bf16.mxu1 %v4181_v48 }
 0x234   :  { %2750 = vmatpush1.bf16.msra.mxu0 %v4178_v49  ;;  %3595 = vmatpush3.bf16.msra.mxu1 %v4182_v50  ;;  %v2173_v50 = vld [vmem:[%s4563_s4] sm:$0x7] }
 0x235   :  { %2751 = vmatprep.subr.bf16.mxu0 %v4185_v51  ;;  %3596 = vmatprep.subr.bf16.mxu1 %v4186_v52  ;;  %v2186_v51 = vrot.slane %v2173_v50, %v359_v5 }
 0x238   :  { %2752 = vmatpush1.bf16.msra.mxu0 %v4183_v53  ;;  %3597 = vmatpush3.bf16.msra.mxu1 %v4187_v54 }
 0x239   :  { %2753 = vmatprep.subr.bf16.mxu0 %v4190_v55  ;;  %3598 = vmatprep.subr.bf16.mxu1 %v4191_v56 }
 0x23c   :  { %2754 = vmatpush1.bf16.msra.mxu0 %v4188_v57  ;;  %3599 = vmatpush3.bf16.msra.mxu1 %v4192_v58 }
 0x23d   :  { %2755 = vmatprep.subr.bf16.mxu0 %v4195_v59  ;;  %3600 = vmatprep.subr.bf16.mxu1 %v4196_v60 }
 0x240   :  { %2756 = vmatpush1.bf16.msra.mxu0 %v4193_v61  ;;  %3601 = vmatpush3.bf16.msra.mxu1 %v4197_v62 }
 0x241   :  { %2757 = vmatprep.subr.bf16.mxu0 %v4200_v63  ;;  %3602 = vmatprep.subr.bf16.mxu1 %v4201_v0 }
 0x244   :  { %2758 = vmatpush1.bf16.msra.mxu0 %v4198_v1  ;;  %3603 = vmatpush3.bf16.msra.mxu1 %v4202_v2  ;;  %v2178_v1 = vrot.slane %v2173_v50, %v351_v4  ;;  %v2182_v2 = vrot.slane %v2173_v50, %v355_v7  ;;  %v4250_v4 = vld [vmem:[#allocation8 + $0x90] sm:$0xff]   ;;  %v4251_v7 = vld [vmem:[#allocation8 + $0x98] sm:$0xff]  }
 0x245   :  { %2759 = vmatprep.subr.bf16.mxu0 %v4205_v6  ;;  %3604 = vmatprep.subr.bf16.mxu1 %v4206_v8 }
 0x248   :  { %2760 = vmatpush1.bf16.msra.mxu0 %v4203_v9  ;;  %3605 = vmatpush3.bf16.msra.mxu1 %v4207_v10 }
 0x249   :  { %2761 = vmatprep.subr.bf16.mxu0 %v4210_v11  ;;  %3612 = vmatprep.subr.bf16.mxu1 %v4232_v19 }
 0x24b   :  { %2862 = vmatmul.mubr.bf16.vlgmr.msra.gmra.mrb[8].mxu1 %v4522_v38 }
 0x24c   :  { %2762 = vmatpush1.bf16.msra.mxu0 %v4208_v12  ;;  %3613 = vmatpush3.bf16.msra.mxu1 %v4233_v28 }
 0x24d   :  { %2763 = vmatprep.subr.bf16.mxu0 %v4213_v13  ;;  %3614 = vmatprep.subr.bf16.mxu1 %v4234_v29 }
 0x250   :  { %2764 = vmatpush1.bf16.msra.mxu0 %v4211_v16  ;;  %3615 = vmatpush3.bf16.msra.mxu1 %v4235_v30 }
 0x251   :  { %2765 = vmatprep.subr.bf16.mxu0 %v4216_v17  ;;  %3616 = vmatprep.subr.bf16.mxu1 %v4236_v31  ;;  %v3543_v31 = vld [vmem:[%s4565_s6] ss:$0 sm:$0xff] }
 0x254   :  { %2766 = vmatpush1.bf16.msra.mxu0 %v4214_v20  ;;  %3617 = vmatpush3.bf16.msra.mxu1 %v4237_v32 }
 0x255   :  { %2767 = vmatprep.subr.bf16.mxu0 %v4219_v21  ;;  %3618 = vmatprep.subr.bf16.mxu1 %v4238_v33 }
 0x258   :  { %2768 = vmatpush1.bf16.msra.mxu0 %v4217_v22  ;;  %3619 = vmatpush3.bf16.msra.mxu1 %v4239_v34 }
 0x259   :  { %2769 = vmatprep.subr.bf16.mxu0 %v4222_v23  ;;  %3620 = vmatprep.subr.bf16.mxu1 %v4240_v35 }
 0x25c   :  { %2770 = vmatpush1.bf16.msra.mxu0 %v4220_v24  ;;  %3621 = vmatpush3.bf16.msra.mxu1 %v4241_v36  ;;  %v4248_v24 = vld [vmem:[#allocation8 + $0x80] sm:$0xff]  }
 0x25d   :  { %2771 = vmatprep.subr.bf16.mxu0 %v4225_v14  ;;  %3622 = vmatprep.subr.bf16.mxu1 %v4242_v37  ;;  %v4252_v14 = vld [vmem:[#allocation8 + $0xa0] sm:$0xff]  }
 0x260   :  { %2772 = vmatpush1.bf16.msra.mxu0 %v4223_v15  ;;  %v4253_v15 = vld [vmem:[#allocation8 + $0xa8] sm:$0xff]  }
 0x261   :  { %2773 = vmatprep.subr.bf16.mxu0 %v4228_v25  ;;  %v4254_v25 = vld [vmem:[#allocation8 + $0xb0] sm:$0xff]  }
 0x264   :  { %2774 = vmatpush1.bf16.msra.mxu0 %v4226_v26  ;;  %v4255_v26 = vld [vmem:[#allocation8 + $0xb8] sm:$0xff]  }
 0x265   :  { %2775 = vmatprep.subr.bf16.mxu0 %v4231_v27 }
 0x268   :  { %2776 = vmatpush1.bf16.msra.mxu0 %v4229_v18 }
 0x26b   :  { %2778 = vmatmul.mubr.bf16.vlgmr.msra.gmra.mrb[4].mxu0 %v4522_v38  ;;  %v4243_v38 = vld [vmem:[#allocation8 + $0x28] sm:$0xff]  }
 0x26c   :  { %3623 = vmatpush3.bf16.msra.mxu1 %v4243_v38 }
 0x26d   :  { %3624 = vmatprep.subr.bf16.mxu1 %v4244_v39 }
 0x270   :  { %3625 = vmatpush3.bf16.msra.mxu1 %v4245_v40 }
 0x271   :  { %3626 = vmatprep.subr.bf16.mxu1 %v4246_v41 }
 0x274   :  { %3627 = vmatpush3.bf16.msra.mxu1 %v4247_v42 }
 0x275   :  { %3643 = vmatprep.subr.bf16.mxu1 %v4390_v43 }
 0x2fe   :  { %v3584_v44 = vpop.f32.mrb[4].mxu1 }
 0x2ff   :  { %v3585_v45 = vpop.f32.mrb[5].mxu1 }
 0x300   :  { %v3586_v46 = vadd.f32 %v3585_v45, %v3584_v44  ;;  %v3587_v47 = vpop.f32.mrb[6].mxu1 }
 0x301   :  { %v3588_v48 = vpop.f32.mrb[7].mxu1 }
 0x302   :  { %v3589_v49 = vadd.f32 %v3588_v48, %v3587_v47  ;;  %v2823_v54 = vadd.f32 %v3586_v46, %v2186_v51 }
 0x304   :  { %v2826_v58 = vadd.f32 %v3589_v49, %v2186_v51 }
 0x31e   :  { %v3606_v52 = vpop.f32.mrb[8].mxu1 }
 0x31f   :  { %v3607_v53 = vpop.f32.mrb[9].mxu1 }
 0x320   :  { %v3608_v55 = vadd.f32 %v3607_v53, %v3606_v52  ;;  %v3609_v56 = vpop.f32.mrb[10].mxu1 }
 0x321   :  { %v3610_v57 = vpop.f32.mrb[11].mxu1 }
 0x322   :  { %v2864_v59 = vadd.f32 %v3608_v55, %v2823_v54  ;;  %v3611_v60 = vadd.f32 %v3610_v57, %v3609_v56 }
 0x324   :  { %v2867_v61 = vadd.f32 %v3611_v60, %v2826_v58  ;;  %v2872_v62 = vmax.f32 %v2864_v59, 0.0 }
 0x326   :  { %v2875_v63 = vmax.f32 %v2867_v61, 0.0 }
 0x328   :  { %v2878_v0 = vpack.c.bf16 %v2875_v63, %v2872_v62 }
 0x33e   :  { %v2779_v5 = vpop.f32.mrb[4].mxu0 }
 0x33f   :  { %v3671_v6 = vadd.f32 %v2779_v5, %v2178_v1  ;;  %v2781_v8 = vpop.f32.mrb[5].mxu0 }
 0x340   :  { %v3672_v9 = vadd.f32 %v2781_v8, %v2182_v2  ;;  %v2783_v10 = vpop.f32.mrb[6].mxu0 }
 0x341   :  { %v3673_v11 = vadd.f32 %v2783_v10, %v2178_v1  ;;  %v2785_v12 = vpop.f32.mrb[7].mxu0  ;;  %v2870_v16 = vmax.f32 %v3671_v6, 0.0 }
 0x342   :  { %v3674_v13 = vadd.f32 %v2785_v12, %v2182_v2  ;;  %v2871_v20 = vmax.f32 %v3672_v9, 0.0 }
 0x343   :  { %v2873_v17 = vmax.f32 %v3673_v11, 0.0 }
 0x344   :  { %v2874_v21 = vmax.f32 %v3674_v13, 0.0 }
 0x345   :  { %v2876_v22 = vpack.c.bf16 %v2873_v17, %v2870_v16 }
 0x346   :  { %v2877_v23 = vpack.c.bf16 %v2874_v21, %v2871_v20 }
 0x348   :  { %3110 = vmatprep.mubr.bf16.mxu1 %v2877_v23 }
 0x349   :  { %3111 = vmatmul.mubr.bf16.vlgmr.msra.gmra.mrb[12].mxu1 %v2876_v22 }
 0x34a   :  { %3644 = vmatpush3.bf16.msra.mxu1 %v4248_v24  ;;  %3659 = vmatprep.mubr.msk.bf16.mxu1 %vm4391_vm0, %v4390_v43 }
 0x34b   :  { %3645 = vmatprep.subr.bf16.mxu1 %v4390_v43 }
 0x34e   :  { %3646 = vmatpush3.bf16.msra.mxu1 %v4249_v3 }
 0x34f   :  { %3647 = vmatprep.subr.bf16.mxu1 %v4390_v43 }
 0x352   :  { %3648 = vmatpush3.bf16.msra.mxu1 %v4250_v4 }
 0x353   :  { %3649 = vmatprep.subr.bf16.mxu1 %v4390_v43 }
 0x356   :  { %3650 = vmatpush3.bf16.msra.mxu1 %v4251_v7 }
 0x357   :  { %3651 = vmatprep.subr.bf16.mxu1 %v4390_v43 }
 0x35a   :  { %3652 = vmatpush3.bf16.msra.mxu1 %v4252_v14 }
 0x35b   :  { %3653 = vmatprep.subr.bf16.mxu1 %v4390_v43 }
 0x35e   :  { %3654 = vmatpush3.bf16.msra.mxu1 %v4253_v15 }
 0x35f   :  { %3655 = vmatprep.subr.bf16.mxu1 %v4390_v43 }
 0x362   :  { %3656 = vmatpush3.bf16.msra.mxu1 %v4254_v25 }
 0x363   :  { %3657 = vmatprep.subr.bf16.mxu1 %v4390_v43 }
 0x366   :  { %3658 = vmatpush3.bf16.msra.mxu1 %v4255_v26 }
 0x369   :  { %3660 = vmatmul.mubr.bf16.vlgmr.msra.gmra.mrb[16].mxu1 %v2878_v0 }
 0x41c   :  { %v3628_v27 = vpop.f32.mrb[12].mxu1 }
 0x41d   :  { %v3629_v18 = vpop.f32.mrb[13].mxu1 }
 0x41e   :  { %v3630_v19 = vadd.f32 %v3629_v18, %v3628_v27  ;;  %v3631_v28 = vpop.f32.mrb[14].mxu1 }
 0x41f   :  { %v3632_v29 = vpop.f32.mrb[15].mxu1 }
 0x420   :  { %v3633_v30 = vadd.f32 %v3632_v29, %v3631_v28  ;;  %v3113_v32 = vadd.f32 %v3630_v19, %v3543_v31 }
 0x422   :  { %v3116_v36 = vadd.f32 %v3633_v30, %v3543_v31 }
 0x43c   :  { %v3153_v33 = vpop.f32.mrb[16].mxu1 }
 0x43d   :  { %v3154_v34 = vadd.f32 %v3153_v33, %v3113_v32  ;;  %v3661_v35 = vpop.f32.mrb[17].mxu1 }
 0x43e   :  { %v3156_v37 = vpop.f32.mrb[18].mxu1 }
 0x43f   :  { %4256 = vtanh.f32 %v3154_v34  ;;  %v3157_v38 = vadd.f32 %v3156_v37, %v3116_v36  ;;  %v3662_v39 = vpop.f32.mrb[19].mxu1 }
 0x441   :  { %4258 = vtanh.f32 %v3157_v38 }
 0x449   :  { %v4257_v40 = vpop.eup %4256 }
 0x44a   :  { %3162 = vst [vmem:[#allocation10] sm:$0xff] %v4257_v40 }
 0x44b   :  { %v4259_v41 = vpop.eup %4258 }
 0x44c   :  { %3163 = vst [vmem:[#allocation10 + $0x8] sm:$0xff] %v4259_v41 }
 0x44d   :  { %4359 = shalt.err (!%p4356_p8)
}
 0x44e   :  { %s4360_s14 = scalar_lea.hbm %s4566_s7, 256 }
 0x44f   :  { %p4361_p9 = scmp.ne.s32.totalorder %s4566_s7, %s4360_s14  ;;  %p4364_p10 = scmp.lt.u32.totalorder %s4360_s14, %s4566_s7 }
 0x451   :  { %p4366_p11 = pnand %p4364_p10, %p4361_p9 }
 0x453   :  { %4369 = shalt.err (!%p4366_p11)
}
 0x454   :  { %s4393_s18 = smov 128   ;;  %s4394_s19 = smov 8  }
 0x455   :  { %3175 = dma.vmem_to_hbm [thread:$0]  %s3170_s11, 256, %s4566_s7, [#allocation4], %s4393_s18, %s4393_s18, %s4394_s19  }
 0x456   :  { %4376 = dma.done.wait [#allocation4], 256  }
 0x457   :  { %4377 = vsyncadd [#allocation4], 4294967040 }
 0x458   :  { %3179 = vsyncpa [#allocation3], 1 }
 0x459   :  { %3180 = vsyncpa [#allocation6], 1 }
 0x45a   :  { %3181 = vsyncpa [#allocation9], 1 }
 0x45b   :  { %3182 = vsyncpa [#allocation4], 1 }

</bundles_post_ra>
